<compile_context>
chip_gen: v7x
topology: tpu7x:2x2x1
jax: 0.10.0
libtpu: 0.0.40
codegen_flags: <defaults>
</compile_context>

<pallas_src>
import functools

import jax
import jax.numpy as jnp
from jax import lax
from jax.experimental import pallas as pl
from jax.experimental.pallas import tpu as pltpu


# ------------------------------ Host wrapper ------------------------------- #

def resnet_basic_stem_pallas(x, weight, gamma, beta, running_mean, running_var,
                             *, kernel, stride, padding, temporal_dilation=1,
                             eps=1e-5, stride_pool=True):
    """x: (N, C_in, T, H, W) f32; weight: (C_out, C_in, KT, KH, KW) f32."""
    N, C_in, T, H, W = x.shape
    C_out = weight.shape[0]
    KT, KH, KW = kernel
    st, sh, sw = stride
    pt, ph, pw = padding
    dil = temporal_dilation

    T_out = (T + 2 * pt - ((KT - 1) * dil + 1)) // st + 1
    H_out = (H + 2 * ph - KH) // sh + 1
    W_out = (W + 2 * pw - KW) // sw + 1

    # space-to-depth factors (== conv spatial strides)
    n_i0 = (KH - 1) // sh + 1        # distinct row offsets per temporal tap
    Hh = H_out + (KH - 1) // sh      # rows kept per H-phase
    Wh = W_out + (KW - 1) // sw
    H2, W2 = Hh * sh, Wh * sw
    T_pad = T + 2 * pt
    L = sh * sw * Wh * C_in          # packed-input lane width (108 here)
    NC = W_out * C_out               # conv-output lane width   (128 here)
    KIDX = KT * n_i0

    if stride_pool:
        # MaxPool3d kernel [1,3,3], stride [1,2,2], padding [0,1,1]
        assert W_out % 2 == 0, "fused pool path assumes even W_out"
        H_p = (H_out - 1) // 2 + 1
        W_p = W_out // 2

    # ---- glue on the SMALL raw input: channels-last, zero pad, space-to-depth
    x_cl = jnp.transpose(x, (0, 2, 3, 4, 1))                      # (N,T,H,W,C)
    x_p = jnp.pad(x_cl, ((0, 0), (pt, pt),
                         (ph, max(0, H2 - H - ph)),
                         (pw, max(0, W2 - W - pw)),
                         (0, 0)))[:, :, :H2, :W2, :]
    x_k = x_p.reshape(N, T_pad, Hh, sh, Wh, sw, C_in)
    x_k = jnp.transpose(x_k, (0, 1, 2, 3, 5, 4, 6))               # (N,T,Hh,sh,sw,Wh,C)
    x_k = x_k.reshape(N, T_pad, Hh, L).astype(jnp.bfloat16)

    # ---- fold eval-mode BN; build block-banded weights (L, NC) per (kt, i0) --
    scale = gamma * lax.rsqrt(running_var + eps)
    bias = beta - running_mean * scale

    r = jnp.arange(L)
    a_r = r // (sw * Wh * C_in)                  # H phase
    b_r = (r % (sw * Wh * C_in)) // (Wh * C_in)  # W phase
    j_r = (r % (Wh * C_in)) // C_in              # W phase-row index
    c_r = r % C_in                               # input channel
    col = jnp.arange(NC)
    co_c = col % C_out
    if stride_pool:
        # even/odd-in-W permuted columns -> pooled output falls out lane-aligned
        w_c = 2 * ((col % (W_p * C_out)) // C_out) + col // (W_p * C_out)
    else:
        w_c = col // C_out
    kidx = jnp.arange(KIDX)
    kt_k = kidx // n_i0
    i0_k = kidx % n_i0

    kh = sh * i0_k[:, None, None] + a_r[None, :, None]               # (KIDX,L,1)
    kw = (sw * j_r + b_r)[None, :, None] - sw * w_c[None, None, :]   # (1,L,NC)
    valid = (kh < KH) & (kw >= 0) & (kw < KW)
    vals = weight[co_c[None, None, :], c_r[None, :, None], kt_k[:, None, None],
                  jnp.clip(kh, 0, KH - 1), jnp.clip(kw, 0, KW - 1)]
    w_big = jnp.where(valid, vals, 0.0) * jnp.tile(scale, W_out)[None, None, :]
    w_big = w_big.astype(jnp.bfloat16)                               # (KIDX,L,NC)
    bias_row = jnp.tile(bias, W_out).reshape(1, NC).astype(jnp.float32)

    # static set of padded-input frames the kernel touches
    frames_needed = sorted({t * st + kt * dil
                            for t in range(T_out) for kt in range(KT)})

    # ------------------------------ Pallas kernel -------------------------- #
    def stem_kernel(x_ref, w_ref, b_ref, o_ref):
        b_row = b_ref[...]                                    # (1, NC) f32

        # Hoist frame loads + row-tap slices; reused across (t, kt).
        taps = {}
        for f in frames_needed:
            fr = x_ref[0, f]                                  # (Hh, L) bf16
            taps[f] = [fr[i0:i0 + H_out, :] for i0 in range(n_i0)]

        if stride_pool:
            zero_col = jnp.zeros((H_out, C_out), jnp.float32)

        for t in range(T_out):
            acc = jnp.zeros((H_out, NC), jnp.float32)
            for kt in range(KT):
                tap = taps[t * st + kt * dil]
                for i0 in range(n_i0):
                    acc += jnp.dot(tap[i0], w_ref[kt * n_i0 + i0],
                                   preferred_element_type=jnp.float32)
            # BN bias + ReLU in f32 (scale already folded into the weights)
            y = jnp.maximum(acc + b_row, 0.0)                 # (H_out, NC)

            if not stride_pool:
                o_ref[0, t] = y.astype(o_ref.dtype)
                continue

            # 3x3 / stride-2 / pad-1 max pool, computed directly at stride 2.
            half = NC // 2
            even = y[:, :half]            # w = 0, 2, 4, ...
            odd = y[:, half:]             # w = 1, 3, 5, ...
            # left odd neighbour (w = -1, 1, 3, ...); zero fill is exact, y>=0
            odd_l = jnp.concatenate([zero_col, odd[:, :half - C_out]], axis=1)
            wpool = jnp.maximum(jnp.maximum(even, odd), odd_l)  # (H_out, W_p*C_out)

            rows = []
            for hp in range(H_p):
                lo = max(0, 2 * hp - 1)
                hi = min(H_out - 1, 2 * hp + 1)
                rmax = wpool[lo:lo + 1, :]
                for rr in range(lo + 1, hi + 1):
                    rmax = jnp.maximum(rmax, wpool[rr:rr + 1, :])
                rows.append(rmax)
            o_ref[0, t] = jnp.concatenate(rows, axis=0).astype(o_ref.dtype)

    out_h, out_wc = (H_p, W_p * C_out) if stride_pool else (H_out, NC)
    out = pl.pallas_call(
        stem_kernel,
        out_shape=jax.ShapeDtypeStruct((N, T_out, out_h, out_wc), jnp.float32),
        grid=(N,),
        in_specs=[
            pl.BlockSpec((1, T_pad, Hh, L), lambda n: (n, 0, 0, 0)),
            pl.BlockSpec((KIDX, L, NC), lambda n: (0, 0, 0)),
            pl.BlockSpec((1, NC), lambda n: (0, 0)),
        ],
        out_specs=pl.BlockSpec((1, T_out, out_h, out_wc),
                               lambda n: (n, 0, 0, 0)),
        compiler_params=pltpu.CompilerParams(
            dimension_semantics=("parallel",)),
    )(x_k, w_big, bias_row)

    # tiny final tensor: reshape + transpose back to NCDHW (PyTorch layout)
    if stride_pool:
        y = out.reshape(N, T_out, H_p, W_p, C_out)
    else:
        y = out.reshape(N, T_out, H_out, W_out, C_out)
    return jnp.transpose(y, (0, 4, 1, 2, 3))


# ------------------------------ Reference ---------------------------------- #

def _reference(x, weight, gamma, beta, running_mean, running_var,
               *, kernel, stride, padding, temporal_dilation, eps, stride_pool):
    dn = lax.conv_dimension_numbers(x.shape, weight.shape,
                                    ("NCDHW", "OIDHW", "NCDHW"))
    pt, ph, pw = padding
    y = lax.conv_general_dilated(
        x, weight, window_strides=tuple(stride),
        padding=[(pt, pt), (ph, ph), (pw, pw)],
        rhs_dilation=(temporal_dilation, 1, 1), dimension_numbers=dn)
    s = (gamma / jnp.sqrt(running_var + eps)).reshape(1, -1, 1, 1, 1)
    b = (beta - running_mean * gamma / jnp.sqrt(running_var + eps)).reshape(1, -1, 1, 1, 1)
    y = jnp.maximum(y * s + b, 0.0)
    if stride_pool:
        y = lax.reduce_window(y, -jnp.inf, lax.max,
                              window_dimensions=(1, 1, 1, 3, 3),
                              window_strides=(1, 1, 1, 2, 2),
                              padding=((0, 0), (0, 0), (0, 0), (1, 1), (1, 1)))
    return y


# -------------------------------- Main -------------------------------------- #

if __name__ == "__main__":
    dim_in, dim_out = 3, 16
    kernel = [3, 3, 3]
    stride = [1, 2, 2]
    padding = [1, 1, 1]
    temporal_dilation = 1
    eps = 1e-5
    stride_pool = True

    N, T, H, W = 2, 4, 16, 16

    key = jax.random.PRNGKey(0)
    kx, kw, kg, kb, km, kv = jax.random.split(key, 6)
    x = jax.random.normal(kx, (N, dim_in, T, H, W), dtype=jnp.float32)
    weight = jax.random.normal(kw, (dim_out, dim_in, *kernel), dtype=jnp.float32) * 0.1
    gamma = jax.random.uniform(kg, (dim_out,), dtype=jnp.float32, minval=0.5, maxval=1.5)
    beta = jax.random.normal(kb, (dim_out,), dtype=jnp.float32) * 0.1
    running_mean = jax.random.normal(km, (dim_out,), dtype=jnp.float32) * 0.1
    running_var = jax.random.uniform(kv, (dim_out,), dtype=jnp.float32, minval=0.5, maxval=1.5)

    fn = functools.partial(
        resnet_basic_stem_pallas,
        kernel=kernel, stride=stride, padding=padding,
        temporal_dilation=temporal_dilation, eps=eps, stride_pool=stride_pool)

    out = jax.jit(fn)(x, weight, gamma, beta, running_mean, running_var)
    out = jax.block_until_ready(out)

    ref = _reference(x, weight, gamma, beta, running_mean, running_var,
                     kernel=kernel, stride=stride, padding=padding,
                     temporal_dilation=temporal_dilation, eps=eps,
                     stride_pool=stride_pool)

    assert out.shape == ref.shape, (out.shape, ref.shape)
    # bf16 matmul operands (f32 accumulate) -> loosened tolerance.
    assert jnp.allclose(out, ref, rtol=2e-2, atol=2e-2), \
        float(jnp.max(jnp.abs(out - ref)))

    print("KERNEL_OK")
</pallas_src>

<mosaic_0001>
module attributes {stable_mosaic.version = 11 : i64} {
  func.func @stem_kernel(%arg0: i32, %arg1: memref<1x6x9x108xbf16, #tpu.memory_space<vmem>>, %arg2: memref<6x108x128xbf16, #tpu.memory_space<vmem>>, %arg3: memref<1x128xf32, #tpu.memory_space<vmem>>, %arg4: memref<1x4x4x64xf32, #tpu.memory_space<vmem>>) attributes {dimension_semantics = [#tpu.dimension_semantics<parallel>], iteration_bounds = array<i64: 2>, scalar_prefetch = 0 : i64, scratch_operands = 0 : i64, tpu.core_type = #tpu.core_type<tc>, window_params = [{transform_indices = @transform_0, window_bounds = array<i64: 1, 6, 9, 108>}, {pipeline_mode = #tpu.pipeline_mode<synchronous>, transform_indices = @transform_1, window_bounds = array<i64: 6, 108, 128>}, {pipeline_mode = #tpu.pipeline_mode<synchronous>, transform_indices = @transform_2, window_bounds = array<i64: 1, 128>}, {transform_indices = @transform_3, window_bounds = array<i64: 1, 4, 4, 64>}]} {
    %c0 = arith.constant 0 : index
    %c0_0 = arith.constant 0 : index
    %0 = vector.load %arg3[%c0, %c0_0] : memref<1x128xf32, #tpu.memory_space<vmem>>, vector<1x128xf32>
    %c0_1 = arith.constant 0 : index
    %c0_2 = arith.constant 0 : index
    %c0_3 = arith.constant 0 : index
    %c0_4 = arith.constant 0 : index
    %1 = vector.load %arg1[%c0_1, %c0_2, %c0_3, %c0_4] : memref<1x6x9x108xbf16, #tpu.memory_space<vmem>>, vector<1x1x9x108xbf16>
    %2 = vector.shape_cast %1 : vector<1x1x9x108xbf16> to vector<9x108xbf16>
    %3 = vector.extract_strided_slice %2 {offsets = [0, 0], sizes = [8, 108], strides = [1, 1]} : vector<9x108xbf16> to vector<8x108xbf16>
    %4 = vector.extract_strided_slice %2 {offsets = [1, 0], sizes = [8, 108], strides = [1, 1]} : vector<9x108xbf16> to vector<8x108xbf16>
    %c0_5 = arith.constant 0 : index
    %c1 = arith.constant 1 : index
    %c0_6 = arith.constant 0 : index
    %c0_7 = arith.constant 0 : index
    %5 = vector.load %arg1[%c0_5, %c1, %c0_6, %c0_7] : memref<1x6x9x108xbf16, #tpu.memory_space<vmem>>, vector<1x1x9x108xbf16>
    %6 = vector.shape_cast %5 : vector<1x1x9x108xbf16> to vector<9x108xbf16>
    %7 = vector.extract_strided_slice %6 {offsets = [0, 0], sizes = [8, 108], strides = [1, 1]} : vector<9x108xbf16> to vector<8x108xbf16>
    %8 = vector.extract_strided_slice %6 {offsets = [1, 0], sizes = [8, 108], strides = [1, 1]} : vector<9x108xbf16> to vector<8x108xbf16>
    %c0_8 = arith.constant 0 : index
    %c2 = arith.constant 2 : index
    %c0_9 = arith.constant 0 : index
    %c0_10 = arith.constant 0 : index
    %9 = vector.load %arg1[%c0_8, %c2, %c0_9, %c0_10] : memref<1x6x9x108xbf16, #tpu.memory_space<vmem>>, vector<1x1x9x108xbf16>
    %10 = vector.shape_cast %9 : vector<1x1x9x108xbf16> to vector<9x108xbf16>
    %11 = vector.extract_strided_slice %10 {offsets = [0, 0], sizes = [8, 108], strides = [1, 1]} : vector<9x108xbf16> to vector<8x108xbf16>
    %12 = vector.extract_strided_slice %10 {offsets = [1, 0], sizes = [8, 108], strides = [1, 1]} : vector<9x108xbf16> to vector<8x108xbf16>
    %c0_11 = arith.constant 0 : index
    %c3 = arith.constant 3 : index
    %c0_12 = arith.constant 0 : index
    %c0_13 = arith.constant 0 : index
    %13 = vector.load %arg1[%c0_11, %c3, %c0_12, %c0_13] : memref<1x6x9x108xbf16, #tpu.memory_space<vmem>>, vector<1x1x9x108xbf16>
    %14 = vector.shape_cast %13 : vector<1x1x9x108xbf16> to vector<9x108xbf16>
    %15 = vector.extract_strided_slice %14 {offsets = [0, 0], sizes = [8, 108], strides = [1, 1]} : vector<9x108xbf16> to vector<8x108xbf16>
    %16 = vector.extract_strided_slice %14 {offsets = [1, 0], sizes = [8, 108], strides = [1, 1]} : vector<9x108xbf16> to vector<8x108xbf16>
    %c0_14 = arith.constant 0 : index
    %c4 = arith.constant 4 : index
    %c0_15 = arith.constant 0 : index
    %c0_16 = arith.constant 0 : index
    %17 = vector.load %arg1[%c0_14, %c4, %c0_15, %c0_16] : memref<1x6x9x108xbf16, #tpu.memory_space<vmem>>, vector<1x1x9x108xbf16>
    %18 = vector.shape_cast %17 : vector<1x1x9x108xbf16> to vector<9x108xbf16>
    %19 = vector.extract_strided_slice %18 {offsets = [0, 0], sizes = [8, 108], strides = [1, 1]} : vector<9x108xbf16> to vector<8x108xbf16>
    %20 = vector.extract_strided_slice %18 {offsets = [1, 0], sizes = [8, 108], strides = [1, 1]} : vector<9x108xbf16> to vector<8x108xbf16>
    %c0_17 = arith.constant 0 : index
    %c5 = arith.constant 5 : index
    %c0_18 = arith.constant 0 : index
    %c0_19 = arith.constant 0 : index
    %21 = vector.load %arg1[%c0_17, %c5, %c0_18, %c0_19] : memref<1x6x9x108xbf16, #tpu.memory_space<vmem>>, vector<1x1x9x108xbf16>
    %22 = vector.shape_cast %21 : vector<1x1x9x108xbf16> to vector<9x108xbf16>
    %23 = vector.extract_strided_slice %22 {offsets = [0, 0], sizes = [8, 108], strides = [1, 1]} : vector<9x108xbf16> to vector<8x108xbf16>
    %24 = vector.extract_strided_slice %22 {offsets = [1, 0], sizes = [8, 108], strides = [1, 1]} : vector<9x108xbf16> to vector<8x108xbf16>
    %cst = arith.constant 0.000000e+00 : f32
    %25 = vector.broadcast %cst : f32 to vector<8x16xf32>
    %cst_20 = arith.constant 0.000000e+00 : f32
    %26 = vector.broadcast %cst_20 : f32 to vector<8x128xf32>
    %c0_21 = arith.constant 0 : index
    %c0_22 = arith.constant 0 : index
    %c0_23 = arith.constant 0 : index
    %27 = vector.load %arg2[%c0_21, %c0_22, %c0_23] : memref<6x108x128xbf16, #tpu.memory_space<vmem>>, vector<1x108x128xbf16>
    %28 = vector.shape_cast %27 : vector<1x108x128xbf16> to vector<108x128xbf16>
    %cst_24 = arith.constant dense<0.000000e+00> : vector<8x128xf32>
    %29 = tpu.matmul %3, %28, %cst_24 {dimension_numbers = #tpu.dot_dimension_numbers<[1], [0], [0], [1], [0, 0, 1, 1], [], []>} : vector<8x108xbf16>, vector<108x128xbf16>, vector<8x128xf32> -> vector<8x128xf32>
    %30 = arith.addf %26, %29 : vector<8x128xf32>
    %c1_25 = arith.constant 1 : index
    %c0_26 = arith.constant 0 : index
    %c0_27 = arith.constant 0 : index
    %31 = vector.load %arg2[%c1_25, %c0_26, %c0_27] : memref<6x108x128xbf16, #tpu.memory_space<vmem>>, vector<1x108x128xbf16>
    %32 = vector.shape_cast %31 : vector<1x108x128xbf16> to vector<108x128xbf16>
    %cst_28 = arith.constant dense<0.000000e+00> : vector<8x128xf32>
    %33 = tpu.matmul %4, %32, %cst_28 {dimension_numbers = #tpu.dot_dimension_numbers<[1], [0], [0], [1], [0, 0, 1, 1], [], []>} : vector<8x108xbf16>, vector<108x128xbf16>, vector<8x128xf32> -> vector<8x128xf32>
    %34 = arith.addf %30, %33 : vector<8x128xf32>
    %c2_29 = arith.constant 2 : index
    %c0_30 = arith.constant 0 : index
    %c0_31 = arith.constant 0 : index
    %35 = vector.load %arg2[%c2_29, %c0_30, %c0_31] : memref<6x108x128xbf16, #tpu.memory_space<vmem>>, vector<1x108x128xbf16>
    %36 = vector.shape_cast %35 : vector<1x108x128xbf16> to vector<108x128xbf16>
    %cst_32 = arith.constant dense<0.000000e+00> : vector<8x128xf32>
    %37 = tpu.matmul %7, %36, %cst_32 {dimension_numbers = #tpu.dot_dimension_numbers<[1], [0], [0], [1], [0, 0, 1, 1], [], []>} : vector<8x108xbf16>, vector<108x128xbf16>, vector<8x128xf32> -> vector<8x128xf32>
    %38 = arith.addf %34, %37 : vector<8x128xf32>
    %c3_33 = arith.constant 3 : index
    %c0_34 = arith.constant 0 : index
    %c0_35 = arith.constant 0 : index
    %39 = vector.load %arg2[%c3_33, %c0_34, %c0_35] : memref<6x108x128xbf16, #tpu.memory_space<vmem>>, vector<1x108x128xbf16>
    %40 = vector.shape_cast %39 : vector<1x108x128xbf16> to vector<108x128xbf16>
    %cst_36 = arith.constant dense<0.000000e+00> : vector<8x128xf32>
    %41 = tpu.matmul %8, %40, %cst_36 {dimension_numbers = #tpu.dot_dimension_numbers<[1], [0], [0], [1], [0, 0, 1, 1], [], []>} : vector<8x108xbf16>, vector<108x128xbf16>, vector<8x128xf32> -> vector<8x128xf32>
    %42 = arith.addf %38, %41 : vector<8x128xf32>
    %c4_37 = arith.constant 4 : index
    %c0_38 = arith.constant 0 : index
    %c0_39 = arith.constant 0 : index
    %43 = vector.load %arg2[%c4_37, %c0_38, %c0_39] : memref<6x108x128xbf16, #tpu.memory_space<vmem>>, vector<1x108x128xbf16>
    %44 = vector.shape_cast %43 : vector<1x108x128xbf16> to vector<108x128xbf16>
    %cst_40 = arith.constant dense<0.000000e+00> : vector<8x128xf32>
    %45 = tpu.matmul %11, %44, %cst_40 {dimension_numbers = #tpu.dot_dimension_numbers<[1], [0], [0], [1], [0, 0, 1, 1], [], []>} : vector<8x108xbf16>, vector<108x128xbf16>, vector<8x128xf32> -> vector<8x128xf32>
    %46 = arith.addf %42, %45 : vector<8x128xf32>
    %c5_41 = arith.constant 5 : index
    %c0_42 = arith.constant 0 : index
    %c0_43 = arith.constant 0 : index
    %47 = vector.load %arg2[%c5_41, %c0_42, %c0_43] : memref<6x108x128xbf16, #tpu.memory_space<vmem>>, vector<1x108x128xbf16>
    %48 = vector.shape_cast %47 : vector<1x108x128xbf16> to vector<108x128xbf16>
    %cst_44 = arith.constant dense<0.000000e+00> : vector<8x128xf32>
    %49 = tpu.matmul %12, %48, %cst_44 {dimension_numbers = #tpu.dot_dimension_numbers<[1], [0], [0], [1], [0, 0, 1, 1], [], []>} : vector<8x108xbf16>, vector<108x128xbf16>, vector<8x128xf32> -> vector<8x128xf32>
    %50 = arith.addf %46, %49 : vector<8x128xf32>
    %51 = vector.broadcast %0 : vector<1x128xf32> to vector<8x128xf32>
    %52 = arith.addf %50, %51 : vector<8x128xf32>
    %cst_45 = arith.constant 0.000000e+00 : f32
    %53 = vector.broadcast %cst_45 : f32 to vector<8x128xf32>
    %54 = arith.maximumf %52, %53 : vector<8x128xf32>
    %55 = vector.extract_strided_slice %54 {offsets = [0, 0], sizes = [8, 64], strides = [1, 1]} : vector<8x128xf32> to vector<8x64xf32>
    %56 = vector.extract_strided_slice %54 {offsets = [0, 64], sizes = [8, 64], strides = [1, 1]} : vector<8x128xf32> to vector<8x64xf32>
    %57 = vector.extract_strided_slice %56 {offsets = [0, 0], sizes = [8, 48], strides = [1, 1]} : vector<8x64xf32> to vector<8x48xf32>
    %58 = tpu.concatenate %25, %57 in 1 : vector<8x16xf32>, vector<8x48xf32> -> vector<8x64xf32>
    %59 = arith.maximumf %55, %56 : vector<8x64xf32>
    %60 = arith.maximumf %59, %58 : vector<8x64xf32>
    %61 = vector.extract_strided_slice %60 {offsets = [0, 0], sizes = [1, 64], strides = [1, 1]} : vector<8x64xf32> to vector<1x64xf32>
    %62 = vector.extract_strided_slice %60 {offsets = [1, 0], sizes = [1, 64], strides = [1, 1]} : vector<8x64xf32> to vector<1x64xf32>
    %63 = arith.maximumf %61, %62 : vector<1x64xf32>
    %64 = vector.extract_strided_slice %60 {offsets = [1, 0], sizes = [1, 64], strides = [1, 1]} : vector<8x64xf32> to vector<1x64xf32>
    %65 = vector.extract_strided_slice %60 {offsets = [2, 0], sizes = [1, 64], strides = [1, 1]} : vector<8x64xf32> to vector<1x64xf32>
    %66 = arith.maximumf %64, %65 : vector<1x64xf32>
    %67 = vector.extract_strided_slice %60 {offsets = [3, 0], sizes = [1, 64], strides = [1, 1]} : vector<8x64xf32> to vector<1x64xf32>
    %68 = arith.maximumf %66, %67 : vector<1x64xf32>
    %69 = vector.extract_strided_slice %60 {offsets = [3, 0], sizes = [1, 64], strides = [1, 1]} : vector<8x64xf32> to vector<1x64xf32>
    %70 = vector.extract_strided_slice %60 {offsets = [4, 0], sizes = [1, 64], strides = [1, 1]} : vector<8x64xf32> to vector<1x64xf32>
    %71 = arith.maximumf %69, %70 : vector<1x64xf32>
    %72 = vector.extract_strided_slice %60 {offsets = [5, 0], sizes = [1, 64], strides = [1, 1]} : vector<8x64xf32> to vector<1x64xf32>
    %73 = arith.maximumf %71, %72 : vector<1x64xf32>
    %74 = vector.extract_strided_slice %60 {offsets = [5, 0], sizes = [1, 64], strides = [1, 1]} : vector<8x64xf32> to vector<1x64xf32>
    %75 = vector.extract_strided_slice %60 {offsets = [6, 0], sizes = [1, 64], strides = [1, 1]} : vector<8x64xf32> to vector<1x64xf32>
    %76 = arith.maximumf %74, %75 : vector<1x64xf32>
    %77 = vector.extract_strided_slice %60 {offsets = [7, 0], sizes = [1, 64], strides = [1, 1]} : vector<8x64xf32> to vector<1x64xf32>
    %78 = arith.maximumf %76, %77 : vector<1x64xf32>
    %79 = tpu.concatenate %63, %68, %73, %78 in 0 : vector<1x64xf32>, vector<1x64xf32>, vector<1x64xf32>, vector<1x64xf32> -> vector<4x64xf32>
    %c0_46 = arith.constant 0 : index
    %c0_47 = arith.constant 0 : index
    %c0_48 = arith.constant 0 : index
    %c0_49 = arith.constant 0 : index
    %80 = vector.load %arg4[%c0_46, %c0_47, %c0_48, %c0_49] : memref<1x4x4x64xf32, #tpu.memory_space<vmem>>, vector<1x1x4x64xf32>
    %81 = vector.shape_cast %80 : vector<1x1x4x64xf32> to vector<4x64xf32>
    %82 = vector.shape_cast %79 : vector<4x64xf32> to vector<1x1x4x64xf32>
    tpu.vector_store %arg4[%c0_46, %c0_47, %c0_48, %c0_49], %82 {strides = array<i32>} : memref<1x4x4x64xf32, #tpu.memory_space<vmem>>, vector<1x1x4x64xf32>,
    %cst_50 = arith.constant 0.000000e+00 : f32
    %83 = vector.broadcast %cst_50 : f32 to vector<8x128xf32>
    %c0_51 = arith.constant 0 : index
    %c0_52 = arith.constant 0 : index
    %c0_53 = arith.constant 0 : index
    %84 = vector.load %arg2[%c0_51, %c0_52, %c0_53] : memref<6x108x128xbf16, #tpu.memory_space<vmem>>, vector<1x108x128xbf16>
    %85 = vector.shape_cast %84 : vector<1x108x128xbf16> to vector<108x128xbf16>
    %cst_54 = arith.constant dense<0.000000e+00> : vector<8x128xf32>
    %86 = tpu.matmul %7, %85, %cst_54 {dimension_numbers = #tpu.dot_dimension_numbers<[1], [0], [0], [1], [0, 0, 1, 1], [], []>} : vector<8x108xbf16>, vector<108x128xbf16>, vector<8x128xf32> -> vector<8x128xf32>
    %87 = arith.addf %83, %86 : vector<8x128xf32>
    %c1_55 = arith.constant 1 : index
    %c0_56 = arith.constant 0 : index
    %c0_57 = arith.constant 0 : index
    %88 = vector.load %arg2[%c1_55, %c0_56, %c0_57] : memref<6x108x128xbf16, #tpu.memory_space<vmem>>, vector<1x108x128xbf16>
    %89 = vector.shape_cast %88 : vector<1x108x128xbf16> to vector<108x128xbf16>
    %cst_58 = arith.constant dense<0.000000e+00> : vector<8x128xf32>
    %90 = tpu.matmul %8, %89, %cst_58 {dimension_numbers = #tpu.dot_dimension_numbers<[1], [0], [0], [1], [0, 0, 1, 1], [], []>} : vector<8x108xbf16>, vector<108x128xbf16>, vector<8x128xf32> -> vector<8x128xf32>
    %91 = arith.addf %87, %90 : vector<8x128xf32>
    %c2_59 = arith.constant 2 : index
    %c0_60 = arith.constant 0 : index
    %c0_61 = arith.constant 0 : index
    %92 = vector.load %arg2[%c2_59, %c0_60, %c0_61] : memref<6x108x128xbf16, #tpu.memory_space<vmem>>, vector<1x108x128xbf16>
    %93 = vector.shape_cast %92 : vector<1x108x128xbf16> to vector<108x128xbf16>
    %cst_62 = arith.constant dense<0.000000e+00> : vector<8x128xf32>
    %94 = tpu.matmul %11, %93, %cst_62 {dimension_numbers = #tpu.dot_dimension_numbers<[1], [0], [0], [1], [0, 0, 1, 1], [], []>} : vector<8x108xbf16>, vector<108x128xbf16>, vector<8x128xf32> -> vector<8x128xf32>
    %95 = arith.addf %91, %94 : vector<8x128xf32>
    %c3_63 = arith.constant 3 : index
    %c0_64 = arith.constant 0 : index
    %c0_65 = arith.constant 0 : index
    %96 = vector.load %arg2[%c3_63, %c0_64, %c0_65] : memref<6x108x128xbf16, #tpu.memory_space<vmem>>, vector<1x108x128xbf16>
    %97 = vector.shape_cast %96 : vector<1x108x128xbf16> to vector<108x128xbf16>
    %cst_66 = arith.constant dense<0.000000e+00> : vector<8x128xf32>
    %98 = tpu.matmul %12, %97, %cst_66 {dimension_numbers = #tpu.dot_dimension_numbers<[1], [0], [0], [1], [0, 0, 1, 1], [], []>} : vector<8x108xbf16>, vector<108x128xbf16>, vector<8x128xf32> -> vector<8x128xf32>
    %99 = arith.addf %95, %98 : vector<8x128xf32>
    %c4_67 = arith.constant 4 : index
    %c0_68 = arith.constant 0 : index
    %c0_69 = arith.constant 0 : index
    %100 = vector.load %arg2[%c4_67, %c0_68, %c0_69] : memref<6x108x128xbf16, #tpu.memory_space<vmem>>, vector<1x108x128xbf16>
    %101 = vector.shape_cast %100 : vector<1x108x128xbf16> to vector<108x128xbf16>
    %cst_70 = arith.constant dense<0.000000e+00> : vector<8x128xf32>
    %102 = tpu.matmul %15, %101, %cst_70 {dimension_numbers = #tpu.dot_dimension_numbers<[1], [0], [0], [1], [0, 0, 1, 1], [], []>} : vector<8x108xbf16>, vector<108x128xbf16>, vector<8x128xf32> -> vector<8x128xf32>
    %103 = arith.addf %99, %102 : vector<8x128xf32>
    %c5_71 = arith.constant 5 : index
    %c0_72 = arith.constant 0 : index
    %c0_73 = arith.constant 0 : index
    %104 = vector.load %arg2[%c5_71, %c0_72, %c0_73] : memref<6x108x128xbf16, #tpu.memory_space<vmem>>, vector<1x108x128xbf16>
    %105 = vector.shape_cast %104 : vector<1x108x128xbf16> to vector<108x128xbf16>
    %cst_74 = arith.constant dense<0.000000e+00> : vector<8x128xf32>
    %106 = tpu.matmul %16, %105, %cst_74 {dimension_numbers = #tpu.dot_dimension_numbers<[1], [0], [0], [1], [0, 0, 1, 1], [], []>} : vector<8x108xbf16>, vector<108x128xbf16>, vector<8x128xf32> -> vector<8x128xf32>
    %107 = arith.addf %103, %106 : vector<8x128xf32>
    %108 = vector.broadcast %0 : vector<1x128xf32> to vector<8x128xf32>
    %109 = arith.addf %107, %108 : vector<8x128xf32>
    %cst_75 = arith.constant 0.000000e+00 : f32
    %110 = vector.broadcast %cst_75 : f32 to vector<8x128xf32>
    %111 = arith.maximumf %109, %110 : vector<8x128xf32>
    %112 = vector.extract_strided_slice %111 {offsets = [0, 0], sizes = [8, 64], strides = [1, 1]} : vector<8x128xf32> to vector<8x64xf32>
    %113 = vector.extract_strided_slice %111 {offsets = [0, 64], sizes = [8, 64], strides = [1, 1]} : vector<8x128xf32> to vector<8x64xf32>
    %114 = vector.extract_strided_slice %113 {offsets = [0, 0], sizes = [8, 48], strides = [1, 1]} : vector<8x64xf32> to vector<8x48xf32>
    %115 = tpu.concatenate %25, %114 in 1 : vector<8x16xf32>, vector<8x48xf32> -> vector<8x64xf32>
    %116 = arith.maximumf %112, %113 : vector<8x64xf32>
    %117 = arith.maximumf %116, %115 : vector<8x64xf32>
    %118 = vector.extract_strided_slice %117 {offsets = [0, 0], sizes = [1, 64], strides = [1, 1]} : vector<8x64xf32> to vector<1x64xf32>
    %119 = vector.extract_strided_slice %117 {offsets = [1, 0], sizes = [1, 64], strides = [1, 1]} : vector<8x64xf32> to vector<1x64xf32>
    %120 = arith.maximumf %118, %119 : vector<1x64xf32>
    %121 = vector.extract_strided_slice %117 {offsets = [1, 0], sizes = [1, 64], strides = [1, 1]} : vector<8x64xf32> to vector<1x64xf32>
    %122 = vector.extract_strided_slice %117 {offsets = [2, 0], sizes = [1, 64], strides = [1, 1]} : vector<8x64xf32> to vector<1x64xf32>
    %123 = arith.maximumf %121, %122 : vector<1x64xf32>
    %124 = vector.extract_strided_slice %117 {offsets = [3, 0], sizes = [1, 64], strides = [1, 1]} : vector<8x64xf32> to vector<1x64xf32>
    %125 = arith.maximumf %123, %124 : vector<1x64xf32>
    %126 = vector.extract_strided_slice %117 {offsets = [3, 0], sizes = [1, 64], strides = [1, 1]} : vector<8x64xf32> to vector<1x64xf32>
    %127 = vector.extract_strided_slice %117 {offsets = [4, 0], sizes = [1, 64], strides = [1, 1]} : vector<8x64xf32> to vector<1x64xf32>
    %128 = arith.maximumf %126, %127 : vector<1x64xf32>
    %129 = vector.extract_strided_slice %117 {offsets = [5, 0], sizes = [1, 64], strides = [1, 1]} : vector<8x64xf32> to vector<1x64xf32>
    %130 = arith.maximumf %128, %129 : vector<1x64xf32>
    %131 = vector.extract_strided_slice %117 {offsets = [5, 0], sizes = [1, 64], strides = [1, 1]} : vector<8x64xf32> to vector<1x64xf32>
    %132 = vector.extract_strided_slice %117 {offsets = [6, 0], sizes = [1, 64], strides = [1, 1]} : vector<8x64xf32> to vector<1x64xf32>
    %133 = arith.maximumf %131, %132 : vector<1x64xf32>
    %134 = vector.extract_strided_slice %117 {offsets = [7, 0], sizes = [1, 64], strides = [1, 1]} : vector<8x64xf32> to vector<1x64xf32>
    %135 = arith.maximumf %133, %134 : vector<1x64xf32>
    %136 = tpu.concatenate %120, %125, %130, %135 in 0 : vector<1x64xf32>, vector<1x64xf32>, vector<1x64xf32>, vector<1x64xf32> -> vector<4x64xf32>
    %c0_76 = arith.constant 0 : index
    %c1_77 = arith.constant 1 : index
    %c0_78 = arith.constant 0 : index
    %c0_79 = arith.constant 0 : index
    %137 = vector.load %arg4[%c0_76, %c1_77, %c0_78, %c0_79] : memref<1x4x4x64xf32, #tpu.memory_space<vmem>>, vector<1x1x4x64xf32>
    %138 = vector.shape_cast %137 : vector<1x1x4x64xf32> to vector<4x64xf32>
    %139 = vector.shape_cast %136 : vector<4x64xf32> to vector<1x1x4x64xf32>
    tpu.vector_store %arg4[%c0_76, %c1_77, %c0_78, %c0_79], %139 {strides = array<i32>} : memref<1x4x4x64xf32, #tpu.memory_space<vmem>>, vector<1x1x4x64xf32>,
    %cst_80 = arith.constant 0.000000e+00 : f32
    %140 = vector.broadcast %cst_80 : f32 to vector<8x128xf32>
    %c0_81 = arith.constant 0 : index
    %c0_82 = arith.constant 0 : index
    %c0_83 = arith.constant 0 : index
    %141 = vector.load %arg2[%c0_81, %c0_82, %c0_83] : memref<6x108x128xbf16, #tpu.memory_space<vmem>>, vector<1x108x128xbf16>
    %142 = vector.shape_cast %141 : vector<1x108x128xbf16> to vector<108x128xbf16>
    %cst_84 = arith.constant dense<0.000000e+00> : vector<8x128xf32>
    %143 = tpu.matmul %11, %142, %cst_84 {dimension_numbers = #tpu.dot_dimension_numbers<[1], [0], [0], [1], [0, 0, 1, 1], [], []>} : vector<8x108xbf16>, vector<108x128xbf16>, vector<8x128xf32> -> vector<8x128xf32>
    %144 = arith.addf %140, %143 : vector<8x128xf32>
    %c1_85 = arith.constant 1 : index
    %c0_86 = arith.constant 0 : index
    %c0_87 = arith.constant 0 : index
    %145 = vector.load %arg2[%c1_85, %c0_86, %c0_87] : memref<6x108x128xbf16, #tpu.memory_space<vmem>>, vector<1x108x128xbf16>
    %146 = vector.shape_cast %145 : vector<1x108x128xbf16> to vector<108x128xbf16>
    %cst_88 = arith.constant dense<0.000000e+00> : vector<8x128xf32>
    %147 = tpu.matmul %12, %146, %cst_88 {dimension_numbers = #tpu.dot_dimension_numbers<[1], [0], [0], [1], [0, 0, 1, 1], [], []>} : vector<8x108xbf16>, vector<108x128xbf16>, vector<8x128xf32> -> vector<8x128xf32>
    %148 = arith.addf %144, %147 : vector<8x128xf32>
    %c2_89 = arith.constant 2 : index
    %c0_90 = arith.constant 0 : index
    %c0_91 = arith.constant 0 : index
    %149 = vector.load %arg2[%c2_89, %c0_90, %c0_91] : memref<6x108x128xbf16, #tpu.memory_space<vmem>>, vector<1x108x128xbf16>
    %150 = vector.shape_cast %149 : vector<1x108x128xbf16> to vector<108x128xbf16>
    %cst_92 = arith.constant dense<0.000000e+00> : vector<8x128xf32>
    %151 = tpu.matmul %15, %150, %cst_92 {dimension_numbers = #tpu.dot_dimension_numbers<[1], [0], [0], [1], [0, 0, 1, 1], [], []>} : vector<8x108xbf16>, vector<108x128xbf16>, vector<8x128xf32> -> vector<8x128xf32>
    %152 = arith.addf %148, %151 : vector<8x128xf32>
    %c3_93 = arith.constant 3 : index
    %c0_94 = arith.constant 0 : index
    %c0_95 = arith.constant 0 : index
    %153 = vector.load %arg2[%c3_93, %c0_94, %c0_95] : memref<6x108x128xbf16, #tpu.memory_space<vmem>>, vector<1x108x128xbf16>
    %154 = vector.shape_cast %153 : vector<1x108x128xbf16> to vector<108x128xbf16>
    %cst_96 = arith.constant dense<0.000000e+00> : vector<8x128xf32>
    %155 = tpu.matmul %16, %154, %cst_96 {dimension_numbers = #tpu.dot_dimension_numbers<[1], [0], [0], [1], [0, 0, 1, 1], [], []>} : vector<8x108xbf16>, vector<108x128xbf16>, vector<8x128xf32> -> vector<8x128xf32>
    %156 = arith.addf %152, %155 : vector<8x128xf32>
    %c4_97 = arith.constant 4 : index
    %c0_98 = arith.constant 0 : index
    %c0_99 = arith.constant 0 : index
    %157 = vector.load %arg2[%c4_97, %c0_98, %c0_99] : memref<6x108x128xbf16, #tpu.memory_space<vmem>>, vector<1x108x128xbf16>
    %158 = vector.shape_cast %157 : vector<1x108x128xbf16> to vector<108x128xbf16>
    %cst_100 = arith.constant dense<0.000000e+00> : vector<8x128xf32>
    %159 = tpu.matmul %19, %158, %cst_100 {dimension_numbers = #tpu.dot_dimension_numbers<[1], [0], [0], [1], [0, 0, 1, 1], [], []>} : vector<8x108xbf16>, vector<108x128xbf16>, vector<8x128xf32> -> vector<8x128xf32>
    %160 = arith.addf %156, %159 : vector<8x128xf32>
    %c5_101 = arith.constant 5 : index
    %c0_102 = arith.constant 0 : index
    %c0_103 = arith.constant 0 : index
    %161 = vector.load %arg2[%c5_101, %c0_102, %c0_103] : memref<6x108x128xbf16, #tpu.memory_space<vmem>>, vector<1x108x128xbf16>
    %162 = vector.shape_cast %161 : vector<1x108x128xbf16> to vector<108x128xbf16>
    %cst_104 = arith.constant dense<0.000000e+00> : vector<8x128xf32>
    %163 = tpu.matmul %20, %162, %cst_104 {dimension_numbers = #tpu.dot_dimension_numbers<[1], [0], [0], [1], [0, 0, 1, 1], [], []>} : vector<8x108xbf16>, vector<108x128xbf16>, vector<8x128xf32> -> vector<8x128xf32>
    %164 = arith.addf %160, %163 : vector<8x128xf32>
    %165 = vector.broadcast %0 : vector<1x128xf32> to vector<8x128xf32>
    %166 = arith.addf %164, %165 : vector<8x128xf32>
    %cst_105 = arith.constant 0.000000e+00 : f32
    %167 = vector.broadcast %cst_105 : f32 to vector<8x128xf32>
    %168 = arith.maximumf %166, %167 : vector<8x128xf32>
    %169 = vector.extract_strided_slice %168 {offsets = [0, 0], sizes = [8, 64], strides = [1, 1]} : vector<8x128xf32> to vector<8x64xf32>
    %170 = vector.extract_strided_slice %168 {offsets = [0, 64], sizes = [8, 64], strides = [1, 1]} : vector<8x128xf32> to vector<8x64xf32>
    %171 = vector.extract_strided_slice %170 {offsets = [0, 0], sizes = [8, 48], strides = [1, 1]} : vector<8x64xf32> to vector<8x48xf32>
    %172 = tpu.concatenate %25, %171 in 1 : vector<8x16xf32>, vector<8x48xf32> -> vector<8x64xf32>
    %173 = arith.maximumf %169, %170 : vector<8x64xf32>
    %174 = arith.maximumf %173, %172 : vector<8x64xf32>
    %175 = vector.extract_strided_slice %174 {offsets = [0, 0], sizes = [1, 64], strides = [1, 1]} : vector<8x64xf32> to vector<1x64xf32>
    %176 = vector.extract_strided_slice %174 {offsets = [1, 0], sizes = [1, 64], strides = [1, 1]} : vector<8x64xf32> to vector<1x64xf32>
    %177 = arith.maximumf %175, %176 : vector<1x64xf32>
    %178 = vector.extract_strided_slice %174 {offsets = [1, 0], sizes = [1, 64], strides = [1, 1]} : vector<8x64xf32> to vector<1x64xf32>
    %179 = vector.extract_strided_slice %174 {offsets = [2, 0], sizes = [1, 64], strides = [1, 1]} : vector<8x64xf32> to vector<1x64xf32>
    %180 = arith.maximumf %178, %179 : vector<1x64xf32>
    %181 = vector.extract_strided_slice %174 {offsets = [3, 0], sizes = [1, 64], strides = [1, 1]} : vector<8x64xf32> to vector<1x64xf32>
    %182 = arith.maximumf %180, %181 : vector<1x64xf32>
    %183 = vector.extract_strided_slice %174 {offsets = [3, 0], sizes = [1, 64], strides = [1, 1]} : vector<8x64xf32> to vector<1x64xf32>
    %184 = vector.extract_strided_slice %174 {offsets = [4, 0], sizes = [1, 64], strides = [1, 1]} : vector<8x64xf32> to vector<1x64xf32>
    %185 = arith.maximumf %183, %184 : vector<1x64xf32>
    %186 = vector.extract_strided_slice %174 {offsets = [5, 0], sizes = [1, 64], strides = [1, 1]} : vector<8x64xf32> to vector<1x64xf32>
    %187 = arith.maximumf %185, %186 : vector<1x64xf32>
    %188 = vector.extract_strided_slice %174 {offsets = [5, 0], sizes = [1, 64], strides = [1, 1]} : vector<8x64xf32> to vector<1x64xf32>
    %189 = vector.extract_strided_slice %174 {offsets = [6, 0], sizes = [1, 64], strides = [1, 1]} : vector<8x64xf32> to vector<1x64xf32>
    %190 = arith.maximumf %188, %189 : vector<1x64xf32>
    %191 = vector.extract_strided_slice %174 {offsets = [7, 0], sizes = [1, 64], strides = [1, 1]} : vector<8x64xf32> to vector<1x64xf32>
    %192 = arith.maximumf %190, %191 : vector<1x64xf32>
    %193 = tpu.concatenate %177, %182, %187, %192 in 0 : vector<1x64xf32>, vector<1x64xf32>, vector<1x64xf32>, vector<1x64xf32> -> vector<4x64xf32>
    %c0_106 = arith.constant 0 : index
    %c2_107 = arith.constant 2 : index
    %c0_108 = arith.constant 0 : index
    %c0_109 = arith.constant 0 : index
    %194 = vector.load %arg4[%c0_106, %c2_107, %c0_108, %c0_109] : memref<1x4x4x64xf32, #tpu.memory_space<vmem>>, vector<1x1x4x64xf32>
    %195 = vector.shape_cast %194 : vector<1x1x4x64xf32> to vector<4x64xf32>
    %196 = vector.shape_cast %193 : vector<4x64xf32> to vector<1x1x4x64xf32>
    tpu.vector_store %arg4[%c0_106, %c2_107, %c0_108, %c0_109], %196 {strides = array<i32>} : memref<1x4x4x64xf32, #tpu.memory_space<vmem>>, vector<1x1x4x64xf32>,
    %cst_110 = arith.constant 0.000000e+00 : f32
    %197 = vector.broadcast %cst_110 : f32 to vector<8x128xf32>
    %c0_111 = arith.constant 0 : index
    %c0_112 = arith.constant 0 : index
    %c0_113 = arith.constant 0 : index
    %198 = vector.load %arg2[%c0_111, %c0_112, %c0_113] : memref<6x108x128xbf16, #tpu.memory_space<vmem>>, vector<1x108x128xbf16>
    %199 = vector.shape_cast %198 : vector<1x108x128xbf16> to vector<108x128xbf16>
    %cst_114 = arith.constant dense<0.000000e+00> : vector<8x128xf32>
    %200 = tpu.matmul %15, %199, %cst_114 {dimension_numbers = #tpu.dot_dimension_numbers<[1], [0], [0], [1], [0, 0, 1, 1], [], []>} : vector<8x108xbf16>, vector<108x128xbf16>, vector<8x128xf32> -> vector<8x128xf32>
    %201 = arith.addf %197, %200 : vector<8x128xf32>
    %c1_115 = arith.constant 1 : index
    %c0_116 = arith.constant 0 : index
    %c0_117 = arith.constant 0 : index
    %202 = vector.load %arg2[%c1_115, %c0_116, %c0_117] : memref<6x108x128xbf16, #tpu.memory_space<vmem>>, vector<1x108x128xbf16>
    %203 = vector.shape_cast %202 : vector<1x108x128xbf16> to vector<108x128xbf16>
    %cst_118 = arith.constant dense<0.000000e+00> : vector<8x128xf32>
    %204 = tpu.matmul %16, %203, %cst_118 {dimension_numbers = #tpu.dot_dimension_numbers<[1], [0], [0], [1], [0, 0, 1, 1], [], []>} : vector<8x108xbf16>, vector<108x128xbf16>, vector<8x128xf32> -> vector<8x128xf32>
    %205 = arith.addf %201, %204 : vector<8x128xf32>
    %c2_119 = arith.constant 2 : index
    %c0_120 = arith.constant 0 : index
    %c0_121 = arith.constant 0 : index
    %206 = vector.load %arg2[%c2_119, %c0_120, %c0_121] : memref<6x108x128xbf16, #tpu.memory_space<vmem>>, vector<1x108x128xbf16>
    %207 = vector.shape_cast %206 : vector<1x108x128xbf16> to vector<108x128xbf16>
    %cst_122 = arith.constant dense<0.000000e+00> : vector<8x128xf32>
    %208 = tpu.matmul %19, %207, %cst_122 {dimension_numbers = #tpu.dot_dimension_numbers<[1], [0], [0], [1], [0, 0, 1, 1], [], []>} : vector<8x108xbf16>, vector<108x128xbf16>, vector<8x128xf32> -> vector<8x128xf32>
    %209 = arith.addf %205, %208 : vector<8x128xf32>
    %c3_123 = arith.constant 3 : index
    %c0_124 = arith.constant 0 : index
    %c0_125 = arith.constant 0 : index
    %210 = vector.load %arg2[%c3_123, %c0_124, %c0_125] : memref<6x108x128xbf16, #tpu.memory_space<vmem>>, vector<1x108x128xbf16>
    %211 = vector.shape_cast %210 : vector<1x108x128xbf16> to vector<108x128xbf16>
    %cst_126 = arith.constant dense<0.000000e+00> : vector<8x128xf32>
    %212 = tpu.matmul %20, %211, %cst_126 {dimension_numbers = #tpu.dot_dimension_numbers<[1], [0], [0], [1], [0, 0, 1, 1], [], []>} : vector<8x108xbf16>, vector<108x128xbf16>, vector<8x128xf32> -> vector<8x128xf32>
    %213 = arith.addf %209, %212 : vector<8x128xf32>
    %c4_127 = arith.constant 4 : index
    %c0_128 = arith.constant 0 : index
    %c0_129 = arith.constant 0 : index
    %214 = vector.load %arg2[%c4_127, %c0_128, %c0_129] : memref<6x108x128xbf16, #tpu.memory_space<vmem>>, vector<1x108x128xbf16>
    %215 = vector.shape_cast %214 : vector<1x108x128xbf16> to vector<108x128xbf16>
    %cst_130 = arith.constant dense<0.000000e+00> : vector<8x128xf32>
    %216 = tpu.matmul %23, %215, %cst_130 {dimension_numbers = #tpu.dot_dimension_numbers<[1], [0], [0], [1], [0, 0, 1, 1], [], []>} : vector<8x108xbf16>, vector<108x128xbf16>, vector<8x128xf32> -> vector<8x128xf32>
    %217 = arith.addf %213, %216 : vector<8x128xf32>
    %c5_131 = arith.constant 5 : index
    %c0_132 = arith.constant 0 : index
    %c0_133 = arith.constant 0 : index
    %218 = vector.load %arg2[%c5_131, %c0_132, %c0_133] : memref<6x108x128xbf16, #tpu.memory_space<vmem>>, vector<1x108x128xbf16>
    %219 = vector.shape_cast %218 : vector<1x108x128xbf16> to vector<108x128xbf16>
    %cst_134 = arith.constant dense<0.000000e+00> : vector<8x128xf32>
    %220 = tpu.matmul %24, %219, %cst_134 {dimension_numbers = #tpu.dot_dimension_numbers<[1], [0], [0], [1], [0, 0, 1, 1], [], []>} : vector<8x108xbf16>, vector<108x128xbf16>, vector<8x128xf32> -> vector<8x128xf32>
    %221 = arith.addf %217, %220 : vector<8x128xf32>
    %222 = vector.broadcast %0 : vector<1x128xf32> to vector<8x128xf32>
    %223 = arith.addf %221, %222 : vector<8x128xf32>
    %cst_135 = arith.constant 0.000000e+00 : f32
    %224 = vector.broadcast %cst_135 : f32 to vector<8x128xf32>
    %225 = arith.maximumf %223, %224 : vector<8x128xf32>
    %226 = vector.extract_strided_slice %225 {offsets = [0, 0], sizes = [8, 64], strides = [1, 1]} : vector<8x128xf32> to vector<8x64xf32>
    %227 = vector.extract_strided_slice %225 {offsets = [0, 64], sizes = [8, 64], strides = [1, 1]} : vector<8x128xf32> to vector<8x64xf32>
    %228 = vector.extract_strided_slice %227 {offsets = [0, 0], sizes = [8, 48], strides = [1, 1]} : vector<8x64xf32> to vector<8x48xf32>
    %229 = tpu.concatenate %25, %228 in 1 : vector<8x16xf32>, vector<8x48xf32> -> vector<8x64xf32>
    %230 = arith.maximumf %226, %227 : vector<8x64xf32>
    %231 = arith.maximumf %230, %229 : vector<8x64xf32>
    %232 = vector.extract_strided_slice %231 {offsets = [0, 0], sizes = [1, 64], strides = [1, 1]} : vector<8x64xf32> to vector<1x64xf32>
    %233 = vector.extract_strided_slice %231 {offsets = [1, 0], sizes = [1, 64], strides = [1, 1]} : vector<8x64xf32> to vector<1x64xf32>
    %234 = arith.maximumf %232, %233 : vector<1x64xf32>
    %235 = vector.extract_strided_slice %231 {offsets = [1, 0], sizes = [1, 64], strides = [1, 1]} : vector<8x64xf32> to vector<1x64xf32>
    %236 = vector.extract_strided_slice %231 {offsets = [2, 0], sizes = [1, 64], strides = [1, 1]} : vector<8x64xf32> to vector<1x64xf32>
    %237 = arith.maximumf %235, %236 : vector<1x64xf32>
    %238 = vector.extract_strided_slice %231 {offsets = [3, 0], sizes = [1, 64], strides = [1, 1]} : vector<8x64xf32> to vector<1x64xf32>
    %239 = arith.maximumf %237, %238 : vector<1x64xf32>
    %240 = vector.extract_strided_slice %231 {offsets = [3, 0], sizes = [1, 64], strides = [1, 1]} : vector<8x64xf32> to vector<1x64xf32>
    %241 = vector.extract_strided_slice %231 {offsets = [4, 0], sizes = [1, 64], strides = [1, 1]} : vector<8x64xf32> to vector<1x64xf32>
    %242 = arith.maximumf %240, %241 : vector<1x64xf32>
    %243 = vector.extract_strided_slice %231 {offsets = [5, 0], sizes = [1, 64], strides = [1, 1]} : vector<8x64xf32> to vector<1x64xf32>
    %244 = arith.maximumf %242, %243 : vector<1x64xf32>
    %245 = vector.extract_strided_slice %231 {offsets = [5, 0], sizes = [1, 64], strides = [1, 1]} : vector<8x64xf32> to vector<1x64xf32>
    %246 = vector.extract_strided_slice %231 {offsets = [6, 0], sizes = [1, 64], strides = [1, 1]} : vector<8x64xf32> to vector<1x64xf32>
    %247 = arith.maximumf %245, %246 : vector<1x64xf32>
    %248 = vector.extract_strided_slice %231 {offsets = [7, 0], sizes = [1, 64], strides = [1, 1]} : vector<8x64xf32> to vector<1x64xf32>
    %249 = arith.maximumf %247, %248 : vector<1x64xf32>
    %250 = tpu.concatenate %234, %239, %244, %249 in 0 : vector<1x64xf32>, vector<1x64xf32>, vector<1x64xf32>, vector<1x64xf32> -> vector<4x64xf32>
    %c0_136 = arith.constant 0 : index
    %c3_137 = arith.constant 3 : index
    %c0_138 = arith.constant 0 : index
    %c0_139 = arith.constant 0 : index
    %251 = vector.load %arg4[%c0_136, %c3_137, %c0_138, %c0_139] : memref<1x4x4x64xf32, #tpu.memory_space<vmem>>, vector<1x1x4x64xf32>
    %252 = vector.shape_cast %251 : vector<1x1x4x64xf32> to vector<4x64xf32>
    %253 = vector.shape_cast %250 : vector<4x64xf32> to vector<1x1x4x64xf32>
    tpu.vector_store %arg4[%c0_136, %c3_137, %c0_138, %c0_139], %253 {strides = array<i32>} : memref<1x4x4x64xf32, #tpu.memory_space<vmem>>, vector<1x1x4x64xf32>,
    return
  }
  func.func @transform_0(%arg0: i32) -> (i32, i32, i32, i32) {
    %c0_i32 = arith.constant 0 : i32
    %c0_i32_0 = arith.constant 0 : i32
    %c0_i32_1 = arith.constant 0 : i32
    %c0_i32_2 = arith.constant 0 : i32
    return %arg0, %c0_i32, %c0_i32_0, %c0_i32_1 : i32, i32, i32, i32
  }
  func.func @transform_1(%arg0: i32) -> (i32, i32, i32) {
    %c0_i32 = arith.constant 0 : i32
    %c0_i32_0 = arith.constant 0 : i32
    %c0_i32_1 = arith.constant 0 : i32
    %c0_i32_2 = arith.constant 0 : i32
    return %c0_i32, %c0_i32_0, %c0_i32_1 : i32, i32, i32
  }
  func.func @transform_2(%arg0: i32) -> (i32, i32) {
    %c0_i32 = arith.constant 0 : i32
    %c0_i32_0 = arith.constant 0 : i32
    %c0_i32_1 = arith.constant 0 : i32
    return %c0_i32, %c0_i32_0 : i32, i32
  }
  func.func @transform_3(%arg0: i32) -> (i32, i32, i32, i32) {
    %c0_i32 = arith.constant 0 : i32
    %c0_i32_0 = arith.constant 0 : i32
    %c0_i32_1 = arith.constant 0 : i32
    %c0_i32_2 = arith.constant 0 : i32
    return %arg0, %c0_i32, %c0_i32_0, %c0_i32_1 : i32, i32, i32, i32
  }
}

</mosaic_0001>

<bundles_post_ra>
// kernel: tile.13
= control target key start
LH: loop header
LB: loop body
LE: loop exit
PB: predicated region body
PF: predicated region fallthrough
CT: control target
= control target key end

     0   :  { %s22_s0 = inlined_call_operand.vmem [shape: f32[16], index: 0, kind: input, shape index: {}]   ;;  %s23_s1 = inlined_call_operand.vmem [shape: f32[8,16], index: 1, kind: output, shape index: {}]  }
   0x1   :  { %v4_v0 = vld [vmem:[%s22_s0] ss:$0 sm:$0xff] }
   0x2   :  { %5 = vst [vmem:[%s23_s1] sm:$0xff] %v4_v0 }

// kernel: mul.23
= control target key start
LH: loop header
LB: loop body
LE: loop exit
PB: predicated region body
PF: predicated region fallthrough
CT: control target
= control target key end

     0   :  { %s67_s10 = smov 112   ;;  %s68_s11 = smov 80   ;;  %vm3_vm0 = vcmask 130048   ;;  %vm9_vm1 = vcmask 1048448   ;;  %vm15_vm2 = vcmask 917248   ;;  %vm21_vm3 = vcmask 786048   ;;  %s111_s0 = inlined_call_operand.vmem [shape: f32[8,16], index: 0, kind: input, shape index: {}]   ;;  %s112_s1 = inlined_call_operand.vmem [shape: f32[128], index: 1, kind: output, shape index: {}]  }
   0x1   :  { %v53_v0 = vld [vmem:[%s111_s0 + $0x7] sm:$0x1]   ;;  %v55_v1 = vld [vmem:[%s111_s0 + $0x5] sm:$0x1]   ;;  %v54_v2 = vld [vmem:[%s111_s0 + $0x6] sm:$0x1]  }
   0x2   :  { %7 = vrot.lane.b32.xlu0 %v53_v0, %s67_s10  ;;  %19 = vrot.lane.b32.xlu1 %v55_v1, %s68_s11  ;;  %v56_v3 = vld [vmem:[%s111_s0 + $0x4] sm:$0x1]   ;;  %v2_v4 = vld [vmem:[%s111_s0] sm:$0x1]   ;;  %s69_s18 = smov 96   ;;  %s70_s19 = smov 64  }
   0x3   :  { %4 = vst.msk [vmem:[#allocation0] sm:$0x1] %vm3_vm0, %v2_v4   ;;  %v57_v5 = vld [vmem:[%s111_s0 + $0x3] sm:$0x1]   ;;  %v58_v6 = vld [vmem:[%s111_s0 + $0x2] sm:$0x1]  }
   0x4   :  { %s71_s24 = smov 48   ;;  %s72_s25 = smov 32   ;;  %v59_v7 = vld [vmem:[%s111_s0 + $0x1] sm:$0x1]   ;;  %vm27_vm4 = vcmask 654848   ;;  %vm33_vm5 = vcmask 523648  }
   0x5   :  { %s73_s0 = smov 16   ;;  %vm39_vm6 = vcmask 392448   ;;  %vm45_vm7 = vcmask 261248  }
   0x6   :  { %13 = vrot.lane.b32.xlu0 %v54_v2, %s69_s18  ;;  %25 = vrot.lane.b32.xlu1 %v56_v3, %s70_s19 }
   0xa   :  { %31 = vrot.lane.b32.xlu0 %v57_v5, %s71_s24  ;;  %37 = vrot.lane.b32.xlu1 %v58_v6, %s72_s25 }
   0xe   :  { %43 = vrot.lane.b32.xlu0 %v59_v7, %s73_s0 }
  0x74   :  { %v8_v8 = vpop.permute.xlu0 %7   ;;  %v20_v9 = vpop.permute.xlu1 %19  }
  0x75   :  { %10 = vst.msk [vmem:[#allocation0] sm:$0x1] %vm9_vm1, %v8_v8  }
  0x78   :  { %v14_v10 = vpop.permute.xlu0 %13   ;;  %v26_v11 = vpop.permute.xlu1 %25  }
  0x79   :  { %16 = vst.msk [vmem:[#allocation0] sm:$0x1] %vm15_vm2, %v14_v10  }
  0x7a   :  { %22 = vst.msk [vmem:[#allocation0] sm:$0x1] %vm21_vm3, %v20_v9  }
  0x7b   :  { %28 = vst.msk [vmem:[#allocation0] sm:$0x1] %vm27_vm4, %v26_v11  }
  0x7c   :  { %v32_v12 = vpop.permute.xlu0 %31   ;;  %v38_v13 = vpop.permute.xlu1 %37  }
  0x7d   :  { %34 = vst.msk [vmem:[#allocation0] sm:$0x1] %vm33_vm5, %v32_v12  }
  0x7e   :  { %40 = vst.msk [vmem:[#allocation0] sm:$0x1] %vm39_vm6, %v38_v13  }
  0x80   :  { %v44_v14 = vpop.permute.xlu0 %43  }
  0x81   :  { %46 = vst.msk [vmem:[#allocation0] sm:$0x1] %vm45_vm7, %v44_v14  }
  0x88   :  { %v50_v15 = vld [vmem:[#allocation0] sm:$0x1] }
  0x89   :  { %52 = vst [vmem:[%s112_s1] sm:$0x1] %v50_v15 }

// kernel: tile.19
= control target key start
LH: loop header
LB: loop body
LE: loop exit
PB: predicated region body
PF: predicated region fallthrough
CT: control target
= control target key end

     0   :  { %s67_s10 = smov 112   ;;  %s68_s11 = smov 80   ;;  %vm3_vm0 = vcmask 130048   ;;  %vm9_vm1 = vcmask 1048448   ;;  %vm15_vm2 = vcmask 917248   ;;  %vm21_vm3 = vcmask 786048   ;;  %s111_s0 = inlined_call_operand.vmem [shape: f32[8,16], index: 0, kind: input, shape index: {}]   ;;  %s112_s1 = inlined_call_operand.vmem [shape: f32[1,128], index: 1, kind: output, shape index: {}]  }
   0x1   :  { %v53_v0 = vld [vmem:[%s111_s0 + $0x7] sm:$0x1]   ;;  %v55_v1 = vld [vmem:[%s111_s0 + $0x5] sm:$0x1]   ;;  %v54_v2 = vld [vmem:[%s111_s0 + $0x6] sm:$0x1]  }
   0x2   :  { %7 = vrot.lane.b32.xlu0 %v53_v0, %s67_s10  ;;  %19 = vrot.lane.b32.xlu1 %v55_v1, %s68_s11  ;;  %v56_v3 = vld [vmem:[%s111_s0 + $0x4] sm:$0x1]   ;;  %v2_v4 = vld [vmem:[%s111_s0] sm:$0x1]   ;;  %s69_s18 = smov 96   ;;  %s70_s19 = smov 64  }
   0x3   :  { %4 = vst.msk [vmem:[#allocation0] sm:$0x1] %vm3_vm0, %v2_v4   ;;  %v57_v5 = vld [vmem:[%s111_s0 + $0x3] sm:$0x1]   ;;  %v58_v6 = vld [vmem:[%s111_s0 + $0x2] sm:$0x1]  }
   0x4   :  { %s71_s24 = smov 48   ;;  %s72_s25 = smov 32   ;;  %v59_v7 = vld [vmem:[%s111_s0 + $0x1] sm:$0x1]   ;;  %vm27_vm4 = vcmask 654848   ;;  %vm33_vm5 = vcmask 523648  }
   0x5   :  { %s73_s0 = smov 16   ;;  %vm39_vm6 = vcmask 392448   ;;  %vm45_vm7 = vcmask 261248  }
   0x6   :  { %13 = vrot.lane.b32.xlu0 %v54_v2, %s69_s18  ;;  %25 = vrot.lane.b32.xlu1 %v56_v3, %s70_s19 }
   0xa   :  { %31 = vrot.lane.b32.xlu0 %v57_v5, %s71_s24  ;;  %37 = vrot.lane.b32.xlu1 %v58_v6, %s72_s25 }
   0xe   :  { %43 = vrot.lane.b32.xlu0 %v59_v7, %s73_s0 }
  0x74   :  { %v8_v8 = vpop.permute.xlu0 %7   ;;  %v20_v9 = vpop.permute.xlu1 %19  }
  0x75   :  { %10 = vst.msk [vmem:[#allocation0] sm:$0x1] %vm9_vm1, %v8_v8  }
  0x78   :  { %v14_v10 = vpop.permute.xlu0 %13   ;;  %v26_v11 = vpop.permute.xlu1 %25  }
  0x79   :  { %16 = vst.msk [vmem:[#allocation0] sm:$0x1] %vm15_vm2, %v14_v10  }
  0x7a   :  { %22 = vst.msk [vmem:[#allocation0] sm:$0x1] %vm21_vm3, %v20_v9  }
  0x7b   :  { %28 = vst.msk [vmem:[#allocation0] sm:$0x1] %vm27_vm4, %v26_v11  }
  0x7c   :  { %v32_v12 = vpop.permute.xlu0 %31   ;;  %v38_v13 = vpop.permute.xlu1 %37  }
  0x7d   :  { %34 = vst.msk [vmem:[#allocation0] sm:$0x1] %vm33_vm5, %v32_v12  }
  0x7e   :  { %40 = vst.msk [vmem:[#allocation0] sm:$0x1] %vm39_vm6, %v38_v13  }
  0x80   :  { %v44_v14 = vpop.permute.xlu0 %43  }
  0x81   :  { %46 = vst.msk [vmem:[#allocation0] sm:$0x1] %vm45_vm7, %v44_v14  }
  0x88   :  { %v50_v15 = vld [vmem:[#allocation0] sm:$0x1] }
  0x89   :  { %52 = vst [vmem:[%s112_s1] sm:$0x1] %v50_v15 }

// kernel: resnet_basic_stem_pallas.1
= control target key start
LH: loop header
LB: loop body
LE: loop exit
PB: predicated region body
PF: predicated region fallthrough
CT: control target
= control target key end

     0   :  { %s4200_s12 = smov 0   ;;  %s5096_s0 = inlined_call_operand.vmem [shape: bf16[2,6,9,108], index: 0, kind: input, shape index: {}]   ;;  %s5097_s1 = inlined_call_operand.vmem [shape: bf16[6,108,128], index: 1, kind: input, shape index: {}]   ;;  %s5098_s2 = inlined_call_operand.vmem [shape: f32[1,128], index: 2, kind: input, shape index: {}]   ;;  %s5099_s3 = inlined_call_operand.vmem [shape: f32[2,4,4,64], index: 3, kind: output, shape index: {}]  }
   0x1 LB: > { %s2854_s13 = sadd.s32 4294967295, %s4174_s12   ;;  %p2858_p0 = scmp.ge.s32.totalorder %s4174_s12, 1  ;;  %s4174_s12 = sphi %s4200_s12, %s13_s12  }
   0x2   : > { %p137_p1 = scmp.lt.s32.totalorder %s4174_s12, 3 }
   0x4   : > { %p138_p2 = pnand %p2858_p0, %p137_p1 }
   0x5   : > { %v3994_v0 = vld [vmem:[%s5097_s1 + $0x38] sm:$0xff] (!%p138_p2)   ;;  %v4176_v1 = vmov (!%p138_p2), 0.0   ;;  %v3995_v2 = vld [vmem:[%s5097_s1] sm:$0xff] (!%p138_p2)   ;;  %v3997_v4 = vld [vmem:[%s5097_s1 + $0x8] sm:$0xff] (!%p138_p2)   ;;  %p161_p3 = scmp.lt.s32.totalorder (!%p138_p2), %s2854_s13, 1  ;;  %vm4177_vm0 = vmmov (!%p138_p2), 0  }
   0x6   : > { %141 = sbr.rel (%p138_p2) target bundleno = 695 (0x2b7), region = 32  ;;  %3549 = vmatprep.subr.bf16.mxu0 (!%p138_p2), %v4176_v1  ;;  %3567 = vmatprep.subr.bf16.mxu1 (!%p138_p2), %v4176_v1  ;;  %v3996_v3 = vld [vmem:[%s5097_s1 + $0x40] sm:$0xff] (!%p138_p2)   ;;  %v3998_v5 = vld [vmem:[%s5097_s1 + $0x48] sm:$0xff] (!%p138_p2)   ;;  %v3999_v6 = vld [vmem:[%s5097_s1 + $0x10] sm:$0xff] (!%p138_p2)   ;;  %vm276_vm1 = vcmask (!%p138_p2), 1045504   ;;  %vm272_vm2 = vcmask (!%p138_p2), 883712  }
   0x7   : > { %3550 = vmatpush3.bf16.msra.mxu0 (!%p138_p2), %v3994_v0  ;;  %3568 = vmatpush3.bf16.msra.mxu1 (!%p138_p2), %v3995_v2  ;;  %v4000_v7 = vld [vmem:[%s5097_s1 + $0x50] sm:$0xff] (!%p138_p2)   ;;  %v4001_v8 = vld [vmem:[%s5097_s1 + $0x18] sm:$0xff] (!%p138_p2)   ;;  %v4003_v12 = vld [vmem:[%s5097_s1 + $0x20] sm:$0xff] (!%p138_p2)   ;;  %s4178_s15 = smov (!%p138_p2), 64   ;;  %s4179_s20 = smov (!%p138_p2), 80   ;;  %vm855_vm3 = vcmask (!%p138_p2), 130048  }
   0x8   : > { %3551 = vmatprep.subr.bf16.mxu0 (!%p138_p2), %v4176_v1  ;;  %3569 = vmatprep.subr.bf16.mxu1 (!%p138_p2), %v4176_v1  ;;  %v4002_v9 = vld [vmem:[%s5097_s1 + $0x58] sm:$0xff] (!%p138_p2)   ;;  %v4004_v14 = vld [vmem:[%s5097_s1 + $0x60] sm:$0xff] (!%p138_p2)   ;;  %v4005_v15 = vld [vmem:[%s5097_s1 + $0x28] sm:$0xff] (!%p138_p2)   ;;  %vm874_vm4 = vcmask (!%p138_p2), 1040384   ;;  %vm876_vm5 = vcmask (!%p138_p2), 1041408   ;;  %vm878_vm6 = vcmask (!%p138_p2), 1042432  }
   0x9   : > { %3563 = vmatprep.mubr.msk.bf16.mxu0 (!%p138_p2), %vm4177_vm0, %v4176_v1  ;;  %3581 = vmatprep.mubr.msk.bf16.mxu1 (!%p138_p2), %vm4177_vm0, %v4176_v1  ;;  %v4006_v17 = vld [vmem:[%s5097_s1 + $0x68] sm:$0x3f] (!%p138_p2)   ;;  %v4007_v18 = vld [vmem:[%s5097_s1 + $0x30] sm:$0x3f] (!%p138_p2)   ;;  %v4011_v26 = vld [vmem:[%s5097_s1 + $0x78] sm:$0xff] (!%p138_p2)   ;;  %vm880_vm7 = vcmask (!%p138_p2), 519168  }
   0xa   : > { %v278_v21 = vsel (!%p138_p2), %vm276_vm1, %v4006_v17, 0  ;;  %v365_v22 = vsel (!%p138_p2), %vm276_vm1, %v4007_v18, 0  ;;  %v4009_v24 = vld [vmem:[%s5097_s1 + $0x70] sm:$0xff] (!%p138_p2)   ;;  %v4010_v25 = vld [vmem:[%s5097_s1 + $0xa8] sm:$0xff] (!%p138_p2)   ;;  %v4013_v28 = vld [vmem:[%s5097_s1 + $0x80] sm:$0xff] (!%p138_p2)  }
   0xb   : > { %3552 = vmatpush3.bf16.msra.mxu0 (!%p138_p2), %v3996_v3  ;;  %3570 = vmatpush3.bf16.msra.mxu1 (!%p138_p2), %v3997_v4  ;;  %v4012_v27 = vld [vmem:[%s5097_s1 + $0xb0] sm:$0xff] (!%p138_p2)   ;;  %v4014_v29 = vld [vmem:[%s5097_s1 + $0xb8] sm:$0xff] (!%p138_p2)   ;;  %v4015_v30 = vld [vmem:[%s5097_s1 + $0x88] sm:$0xff] (!%p138_p2)  }
   0xc   : > { %3553 = vmatprep.subr.bf16.mxu0 (!%p138_p2), %v4176_v1  ;;  %3571 = vmatprep.subr.bf16.mxu1 (!%p138_p2), %v4176_v1  ;;  %v4016_v31 = vld [vmem:[%s5097_s1 + $0xc0] sm:$0xff] (!%p138_p2)   ;;  %v4017_v34 = vld [vmem:[%s5097_s1 + $0x90] sm:$0xff] (!%p138_p2)   ;;  %v4018_v36 = vld [vmem:[%s5097_s1 + $0xc8] sm:$0xff] (!%p138_p2)  }
   0xd   : > { %s5101_s13 = smov (!%p161_p3, %s2854_s13), 1  ;;  %v4019_v37 = vld [vmem:[%s5097_s1 + $0x98] sm:$0xff]   ;;  %v4020_v38 = vld [vmem:[%s5097_s1 + $0xd0] sm:$0xff]   ;;  %v4021_v40 = vld [vmem:[%s5097_s1 + $0xa0] sm:$0x3f]  }
   0xe   : > { %s3981_s26 = smul.u32 48, %s5101_s13  ;;  %v4022_v41 = vld [vmem:[%s5097_s1 + $0xd8] sm:$0x3f]   ;;  %v467_v44 = vsel %vm276_vm1, %v4021_v40, 0  ;;  %v4024_v47 = vld [vmem:[%s5097_s1 + $0xe0] sm:$0xff]   ;;  %v4026_v49 = vld [vmem:[%s5097_s1 + $0xe8] sm:$0xff]  }
   0xf   : > { %3554 = vmatpush3.bf16.msra.mxu0 %v3998_v5  ;;  %3572 = vmatpush3.bf16.msra.mxu1 %v3999_v6  ;;  %v582_v45 = vsel %vm276_vm1, %v4022_v41, 0  ;;  %v4025_v48 = vld [vmem:[%s5097_s1 + $0x118] sm:$0xff]   ;;  %v4027_v50 = vld [vmem:[%s5097_s1 + $0x120] sm:$0xff]   ;;  %v4028_v51 = vld [vmem:[%s5097_s1 + $0xf0] sm:$0xff]   ;;  %s3356_s22 = sshll.u32 %s5101_s13, 4 }
  0x10   : > { %3555 = vmatprep.subr.bf16.mxu0 %v4176_v1  ;;  %s4249_s6 = scalar_lea.vmem %s5096_s0, %s3981_s26  ;;  %3573 = vmatprep.subr.bf16.mxu1 %v4176_v1  ;;  %v4029_v52 = vld [vmem:[%s5097_s1 + $0x128] sm:$0xff]   ;;  %v4030_v53 = vld [vmem:[%s5097_s1 + $0xf8] sm:$0xff]   ;;  %v4031_v54 = vld [vmem:[%s5097_s1 + $0x130] sm:$0xff]   ;;  %s5062_s25 = scalar_lea.vmem %s5099_s3, %s3356_s22 }
  0x11   : > { %v173_v10 = vld [vmem:[%s4249_s6] sm:$0xf]  ;;  %v174_v11 = vld [vmem:[%s4249_s6 + $0x4] sm:$0x1]  ;;  %v4317_v32 = vld [vmem:[%s4249_s6 + $0x8] sm:$0xf] }
  0x12   : > { %v2886_v13 = vcombine.low %v173_v10, %v174_v11  ;;  %v2863_v33 = vld [vmem:[%s4249_s6 + $0xc] sm:$0x1]  ;;  %v4390_v55 = vld [vmem:[%s4249_s6 + $0x10] sm:$0xf]  ;;  %v2865_v56 = vld [vmem:[%s4249_s6 + $0x14] sm:$0x1] }
  0x13   : > { %3556 = vmatpush3.bf16.msra.mxu0 %v4000_v7  ;;  %3574 = vmatpush3.bf16.msra.mxu1 %v4001_v8  ;;  %v2939_v35 = vcombine.low %v4317_v32, %v2863_v33  ;;  %v4032_v57 = vld [vmem:[%s5097_s1 + $0x100] sm:$0xff]   ;;  %v2984_v58 = vcombine.low %v4390_v55, %v2865_v56  ;;  %v4033_v59 = vld [vmem:[%s5097_s1 + $0x138] sm:$0xff]   ;;  %v4034_v60 = vld [vmem:[%s5097_s1 + $0x108] sm:$0xff]  }
  0x14   : > { %3557 = vmatprep.subr.bf16.mxu0 %v4176_v1  ;;  %3575 = vmatprep.subr.bf16.mxu1 %v4176_v1  ;;  %v227_v16 = vshll.u32 %v2886_v13, 16  ;;  %v225_v19 = vshrl.u32 %v2886_v13, 16  ;;  %v4035_v61 = vld [vmem:[%s5097_s1 + $0x140] sm:$0xff]   ;;  %v4036_v63 = vld [vmem:[%s5097_s1 + $0x110] sm:$0x3f]   ;;  %v4039_v7 = vld [vmem:[%s5097_s1 + $0x38] sm:$0xff]  }
  0x15   : > { %v533_v39 = vshll.u32 %v2939_v35, 16  ;;  %v531_v42 = vshrl.u32 %v2939_v35, 16  ;;  %v751_v62 = vshll.u32 %v2984_v58, 16  ;;  %v4037_v0 = vld [vmem:[%s5097_s1 + $0x148] sm:$0x3f]   ;;  %v749_v2 = vshrl.u32 %v2984_v58, 16 }
  0x16   : > { %v229_v20 = vrot.slane %v227_v16, 1  ;;  %v685_v4 = vsel %vm276_vm1, %v4036_v63, 0  ;;  %v800_v5 = vsel %vm276_vm1, %v4037_v0, 0  ;;  %v4040_v8 = vld [vmem:[%s5097_s1] sm:$0xff]   ;;  %v4043_v11 = vld [vmem:[%s5097_s1 + $0x48] sm:$0xff]   ;;  %v4045_v13 = vld [vmem:[%s5097_s1 + $0x50] sm:$0xff]  }
  0x17   : > { %3558 = vmatpush3.bf16.msra.mxu0 %v4002_v9  ;;  %3576 = vmatpush3.bf16.msra.mxu1 %v4003_v12  ;;  %v535_v43 = vrot.slane %v533_v39, 1  ;;  %v753_v3 = vrot.slane %v751_v62, 1  ;;  %v4041_v9 = vld [vmem:[%s5097_s1 + $0x40] sm:$0xff]   ;;  %v4044_v12 = vld [vmem:[%s5097_s1 + $0x10] sm:$0xff]   ;;  %v4050_v18 = vld [vmem:[%s5097_s1 + $0x28] sm:$0xff]  }
  0x18   : > { %3559 = vmatprep.subr.bf16.mxu0 %v4176_v1  ;;  %3577 = vmatprep.subr.bf16.mxu1 %v4176_v1  ;;  %v230_v23 = vor.u32 %v229_v20, %v225_v19  ;;  %v4048_v16 = vld [vmem:[%s5097_s1 + $0x20] sm:$0xff]   ;;  %v4051_v19 = vld [vmem:[%s5097_s1 + $0x68] sm:$0x3f]   ;;  %v4052_v20 = vld [vmem:[%s5097_s1 + $0x30] sm:$0x3f]  }
  0x19   : > { %v4349_v46 = vor.u32 %v535_v43, %v531_v42  ;;  %v4422_v6 = vor.u32 %v753_v3, %v749_v2  ;;  %v4049_v17 = vld [vmem:[%s5097_s1 + $0x60] sm:$0xff]   ;;  %v4063_v33 = vld [vmem:[%s5097_s1 + $0x98] sm:$0xff]   ;;  %v4069_v41 = vld [vmem:[%s5097_s1 + $0xe8] sm:$0xff]  }
  0x1a   : > { %v4065_v35 = vld [vmem:[%s5097_s1 + $0xa0] sm:$0x3f]   ;;  %v4068_v40 = vld [vmem:[%s5097_s1 + $0x118] sm:$0xff]   ;;  %v4071_v43 = vld [vmem:[%s5097_s1 + $0xf0] sm:$0xff]  }
  0x1b   : > { %3560 = vmatpush3.bf16.msra.mxu0 %v4004_v14  ;;  %3578 = vmatpush3.bf16.msra.mxu1 %v4005_v15  ;;  %v4046_v14 = vld [vmem:[%s5097_s1 + $0x18] sm:$0xff]   ;;  %v4067_v39 = vld [vmem:[%s5097_s1 + $0xe0] sm:$0xff]   ;;  %v4085_v3 = vld [vmem:[%s5097_s1 + $0x8] sm:$0xff]  }
  0x1c   : > { %3561 = vmatprep.subr.bf16.mxu0 %v4176_v1  ;;  %3579 = vmatprep.subr.bf16.mxu1 %v4176_v1  ;;  %v4047_v15 = vld [vmem:[%s5097_s1 + $0x58] sm:$0xff]   ;;  %v4070_v42 = vld [vmem:[%s5097_s1 + $0x120] sm:$0xff]  }
  0x1d   : > { %v4082_v63 = vld [vmem:[%s5097_s1 + $0x38] sm:$0xff]   ;;  %v4083_v0 = vld [vmem:[%s5097_s1] sm:$0xff]  }
  0x1e   : > { %v4084_v2 = vld [vmem:[%s5097_s1 + $0x40] sm:$0xff]  }
  0x1f   : > { %3562 = vmatpush3.bf16.msra.mxu0 %v278_v21  ;;  %3580 = vmatpush3.bf16.msra.mxu1 %v365_v22  ;;  %v952_v21 = vsel %vm276_vm1, %v4051_v19, 0  ;;  %v1036_v22 = vsel %vm276_vm1, %v4052_v20, 0  ;;  %v4098_v19 = vld [vmem:[%s5097_s1 + $0x78] sm:$0xff]   ;;  %v4099_v20 = vld [vmem:[%s5097_s1 + $0xb0] sm:$0xff]  }
  0x20   : > { %3585 = vmatprep.subr.bf16.mxu0 %v4176_v1  ;;  %3603 = vmatprep.subr.bf16.mxu1 %v4176_v1 }
  0x22   : > { %3564 = vmatmul.mubr.msk.bf16.vlgmr.msra.gmra.mrb[0].mxu0 %vm272_vm2, %v230_v23  ;;  %3582 = vmatmul.mubr.msk.bf16.vlgmr.msra.gmra.mrb[0].mxu1 %vm272_vm2, %v173_v10  ;;  %v4042_v10 = vld [vmem:[%s5097_s1 + $0x8] sm:$0xff]   ;;  %v4053_v23 = vld [vmem:[%s5097_s1 + $0x70] sm:$0xff]  }
  0x23   : > { %3586 = vmatpush3.bf16.msra.mxu0 %v4009_v24  ;;  %3604 = vmatpush3.bf16.msra.mxu1 %v4010_v25  ;;  %v4054_v24 = vld [vmem:[%s5097_s1 + $0xa8] sm:$0xff]   ;;  %v4055_v25 = vld [vmem:[%s5097_s1 + $0x78] sm:$0xff]  }
  0x24   : > { %3587 = vmatprep.subr.bf16.mxu0 %v4176_v1  ;;  %3605 = vmatprep.subr.bf16.mxu1 %v4176_v1 }
  0x25   : > { %3599 = vmatprep.mubr.msk.bf16.mxu0 %vm4177_vm0, %v4176_v1  ;;  %3617 = vmatprep.mubr.msk.bf16.mxu1 %vm4177_vm0, %v4176_v1 }
  0x27   : > { %3588 = vmatpush3.bf16.msra.mxu0 %v4011_v26  ;;  %3606 = vmatpush3.bf16.msra.mxu1 %v4012_v27  ;;  %v4056_v26 = vld [vmem:[%s5097_s1 + $0xb0] sm:$0xff]   ;;  %v4057_v27 = vld [vmem:[%s5097_s1 + $0x80] sm:$0xff]  }
  0x28   : > { %3589 = vmatprep.subr.bf16.mxu0 %v4176_v1  ;;  %3607 = vmatprep.subr.bf16.mxu1 %v4176_v1 }
  0x2b   : > { %3590 = vmatpush3.bf16.msra.mxu0 %v4013_v28  ;;  %3608 = vmatpush3.bf16.msra.mxu1 %v4014_v29  ;;  %v4058_v28 = vld [vmem:[%s5097_s1 + $0xb8] sm:$0xff]   ;;  %v4059_v29 = vld [vmem:[%s5097_s1 + $0x88] sm:$0xff]  }
  0x2c   : > { %3591 = vmatprep.subr.bf16.mxu0 %v4176_v1  ;;  %3609 = vmatprep.subr.bf16.mxu1 %v4176_v1 }
  0x2f   : > { %3592 = vmatpush3.bf16.msra.mxu0 %v4015_v30  ;;  %3610 = vmatpush3.bf16.msra.mxu1 %v4016_v31  ;;  %v4060_v30 = vld [vmem:[%s5097_s1 + $0xc0] sm:$0xff]   ;;  %v4061_v31 = vld [vmem:[%s5097_s1 + $0x90] sm:$0xff]  }
  0x30   : > { %3593 = vmatprep.subr.bf16.mxu0 %v4176_v1  ;;  %3611 = vmatprep.subr.bf16.mxu1 %v4176_v1 }
  0x33   : > { %3594 = vmatpush3.bf16.msra.mxu0 %v4017_v34  ;;  %3612 = vmatpush3.bf16.msra.mxu1 %v4018_v36  ;;  %v4064_v34 = vld [vmem:[%s5097_s1 + $0xd0] sm:$0xff]   ;;  %v4066_v36 = vld [vmem:[%s5097_s1 + $0xd8] sm:$0x3f]  }
  0x34   : > { %3595 = vmatprep.subr.bf16.mxu0 %v4176_v1  ;;  %3613 = vmatprep.subr.bf16.mxu1 %v4176_v1 }
  0x37   : > { %3596 = vmatpush3.bf16.msra.mxu0 %v4019_v37  ;;  %3614 = vmatpush3.bf16.msra.mxu1 %v4020_v38  ;;  %v1134_v37 = vsel %vm276_vm1, %v4065_v35, 0  ;;  %v1233_v38 = vsel %vm276_vm1, %v4066_v36, 0  ;;  %v4114_v35 = vld [vmem:[%s5097_s1 + $0xf0] sm:$0xff]   ;;  %v4115_v36 = vld [vmem:[%s5097_s1 + $0x128] sm:$0xff]  }
  0x38   : > { %3597 = vmatprep.subr.bf16.mxu0 %v4176_v1  ;;  %3615 = vmatprep.subr.bf16.mxu1 %v4176_v1 }
  0x3b   : > { %3598 = vmatpush3.bf16.msra.mxu0 %v467_v44  ;;  %3616 = vmatpush3.bf16.msra.mxu1 %v582_v45  ;;  %v4072_v44 = vld [vmem:[%s5097_s1 + $0x128] sm:$0xff]   ;;  %v4073_v45 = vld [vmem:[%s5097_s1 + $0xf8] sm:$0xff]  }
  0x3c   : > { %3621 = vmatprep.subr.bf16.mxu0 %v4176_v1  ;;  %3639 = vmatprep.subr.bf16.mxu1 %v4176_v1 }
  0x3e   : > { %3600 = vmatmul.mubr.msk.bf16.vlgmr.msra.gmra.mrb[4].mxu0 %vm272_vm2, %v4317_v32  ;;  %3618 = vmatmul.mubr.msk.bf16.vlgmr.msra.gmra.mrb[4].mxu1 %vm272_vm2, %v4349_v46 }
  0x3f   : > { %3622 = vmatpush3.bf16.msra.mxu0 %v4024_v47  ;;  %3640 = vmatpush3.bf16.msra.mxu1 %v4025_v48  ;;  %v4074_v47 = vld [vmem:[%s5097_s1 + $0x130] sm:$0xff]   ;;  %v2867_v48 = vld [vmem:[%s4249_s6 + $0x1c] sm:$0x1] }
  0x40   : > { %3623 = vmatprep.subr.bf16.mxu0 %v4176_v1  ;;  %3641 = vmatprep.subr.bf16.mxu1 %v4176_v1 }
  0x41   : > { %3635 = vmatprep.mubr.msk.bf16.mxu0 %vm4177_vm0, %v4176_v1  ;;  %3653 = vmatprep.mubr.msk.bf16.mxu1 %vm4177_vm0, %v4176_v1 }
  0x43   : > { %3624 = vmatpush3.bf16.msra.mxu0 %v4026_v49  ;;  %3642 = vmatpush3.bf16.msra.mxu1 %v4027_v50  ;;  %v4075_v49 = vld [vmem:[%s5097_s1 + $0x100] sm:$0xff]   ;;  %v4076_v50 = vld [vmem:[%s5097_s1 + $0x138] sm:$0xff]  }
  0x44   : > { %3625 = vmatprep.subr.bf16.mxu0 %v4176_v1  ;;  %3643 = vmatprep.subr.bf16.mxu1 %v4176_v1 }
  0x47   : > { %3626 = vmatpush3.bf16.msra.mxu0 %v4028_v51  ;;  %3644 = vmatpush3.bf16.msra.mxu1 %v4029_v52  ;;  %v4077_v52 = vld [vmem:[%s5097_s1 + $0x108] sm:$0xff]  }
  0x48   : > { %3627 = vmatprep.subr.bf16.mxu0 %v4176_v1  ;;  %3645 = vmatprep.subr.bf16.mxu1 %v4176_v1 }
  0x4b   : > { %3628 = vmatpush3.bf16.msra.mxu0 %v4030_v53  ;;  %3646 = vmatpush3.bf16.msra.mxu1 %v4031_v54  ;;  %v4079_v53 = vld [vmem:[%s5097_s1 + $0x110] sm:$0x3f]   ;;  %v4078_v54 = vld [vmem:[%s5097_s1 + $0x140] sm:$0xff]  }
  0x4c   : > { %3629 = vmatprep.subr.bf16.mxu0 %v4176_v1  ;;  %3647 = vmatprep.subr.bf16.mxu1 %v4176_v1  ;;  %v1335_v58 = vsel %vm276_vm1, %v4079_v53, 0 }
  0x4f   : > { %3630 = vmatpush3.bf16.msra.mxu0 %v4032_v57  ;;  %3648 = vmatpush3.bf16.msra.mxu1 %v4033_v59  ;;  %v4080_v57 = vld [vmem:[%s5097_s1 + $0x148] sm:$0x3f]  }
  0x50   : > { %3631 = vmatprep.subr.bf16.mxu0 %v4176_v1  ;;  %3649 = vmatprep.subr.bf16.mxu1 %v4176_v1 }
  0x53   : > { %3632 = vmatpush3.bf16.msra.mxu0 %v4034_v60  ;;  %3650 = vmatpush3.bf16.msra.mxu1 %v4035_v61  ;;  %v1449_v61 = vsel %vm276_vm1, %v4080_v57, 0  ;;  %v4122_v57 = vld [vmem:[%s5097_s1 + $0x110] sm:$0x3f]  }
  0x54   : > { %3633 = vmatprep.subr.bf16.mxu0 %v4176_v1  ;;  %3651 = vmatprep.subr.bf16.mxu1 %v4176_v1 }
  0x57   : > { %3634 = vmatpush3.bf16.msra.mxu0 %v685_v4  ;;  %3652 = vmatpush3.bf16.msra.mxu1 %v800_v5  ;;  %v4086_v4 = vld [vmem:[%s5097_s1 + $0x48] sm:$0xff]   ;;  %v4087_v5 = vld [vmem:[%s5097_s1 + $0x10] sm:$0xff]  }
  0x58   : > { %3657 = vmatprep.subr.bf16.mxu0 %v4176_v1  ;;  %3675 = vmatprep.subr.bf16.mxu1 %v4176_v1 }
  0x5a   : > { %3636 = vmatmul.mubr.msk.bf16.vlgmr.msra.gmra.mrb[8].mxu0 %vm272_vm2, %v4390_v55  ;;  %3654 = vmatmul.mubr.msk.bf16.vlgmr.msra.gmra.mrb[8].mxu1 %vm272_vm2, %v4422_v6 }
  0x5b   : > { %3658 = vmatpush3.bf16.msra.mxu0 %v4039_v7  ;;  %3676 = vmatpush3.bf16.msra.mxu1 %v4040_v8  ;;  %v4088_v7 = vld [vmem:[%s5097_s1 + $0x50] sm:$0xff]   ;;  %v4089_v8 = vld [vmem:[%s5097_s1 + $0x18] sm:$0xff]  }
  0x5c   : > { %3659 = vmatprep.subr.bf16.mxu0 %v4176_v1  ;;  %3677 = vmatprep.subr.bf16.mxu1 %v4176_v1 }
  0x5d   : > { %3671 = vmatprep.mubr.msk.bf16.mxu0 %vm4177_vm0, %v4176_v1  ;;  %3689 = vmatprep.mubr.msk.bf16.mxu1 %vm4177_vm0, %v4176_v1 }
  0x5f   : > { %3660 = vmatpush3.bf16.msra.mxu0 %v4041_v9  ;;  %3678 = vmatpush3.bf16.msra.mxu1 %v4042_v10  ;;  %v4090_v9 = vld [vmem:[%s5097_s1 + $0x58] sm:$0xff]   ;;  %v4091_v10 = vld [vmem:[%s5097_s1 + $0x20] sm:$0xff]  }
  0x60   : > { %3661 = vmatprep.subr.bf16.mxu0 %v4176_v1  ;;  %3679 = vmatprep.subr.bf16.mxu1 %v4176_v1 }
  0x63   : > { %3662 = vmatpush3.bf16.msra.mxu0 %v4043_v11  ;;  %3680 = vmatpush3.bf16.msra.mxu1 %v4044_v12  ;;  %v4092_v11 = vld [vmem:[%s5097_s1 + $0x60] sm:$0xff]   ;;  %v4093_v12 = vld [vmem:[%s5097_s1 + $0x28] sm:$0xff]  }
  0x64   : > { %3663 = vmatprep.subr.bf16.mxu0 %v4176_v1  ;;  %3681 = vmatprep.subr.bf16.mxu1 %v4176_v1 }
  0x67   : > { %3664 = vmatpush3.bf16.msra.mxu0 %v4045_v13  ;;  %3682 = vmatpush3.bf16.msra.mxu1 %v4046_v14  ;;  %v4094_v13 = vld [vmem:[%s5097_s1 + $0x68] sm:$0x3f]   ;;  %v4095_v14 = vld [vmem:[%s5097_s1 + $0x30] sm:$0x3f]  }
  0x68   : > { %3665 = vmatprep.subr.bf16.mxu0 %v4176_v1  ;;  %3683 = vmatprep.subr.bf16.mxu1 %v4176_v1 }
  0x6b   : > { %3666 = vmatpush3.bf16.msra.mxu0 %v4047_v15  ;;  %3684 = vmatpush3.bf16.msra.mxu1 %v4048_v16  ;;  %v1591_v15 = vsel %vm276_vm1, %v4094_v13, 0  ;;  %v1675_v16 = vsel %vm276_vm1, %v4095_v14, 0  ;;  %v4134_v13 = vld [vmem:[%s5097_s1 + $0x20] sm:$0xff]  }
  0x6c   : > { %3667 = vmatprep.subr.bf16.mxu0 %v4176_v1  ;;  %3685 = vmatprep.subr.bf16.mxu1 %v4176_v1 }
  0x6f   : > { %3668 = vmatpush3.bf16.msra.mxu0 %v4049_v17  ;;  %3686 = vmatpush3.bf16.msra.mxu1 %v4050_v18  ;;  %v4096_v17 = vld [vmem:[%s5097_s1 + $0x70] sm:$0xff]   ;;  %v4097_v18 = vld [vmem:[%s5097_s1 + $0xa8] sm:$0xff]  }
  0x70   : > { %3669 = vmatprep.subr.bf16.mxu0 %v4176_v1  ;;  %3687 = vmatprep.subr.bf16.mxu1 %v4176_v1 }
  0x73   : > { %3670 = vmatpush3.bf16.msra.mxu0 %v952_v21  ;;  %3688 = vmatpush3.bf16.msra.mxu1 %v1036_v22  ;;  %v4102_v21 = vld [vmem:[%s5097_s1 + $0x88] sm:$0xff]   ;;  %v4103_v22 = vld [vmem:[%s5097_s1 + $0xc0] sm:$0xff]  }
  0x74   : > { %3693 = vmatprep.subr.bf16.mxu0 %v4176_v1  ;;  %3711 = vmatprep.subr.bf16.mxu1 %v4176_v1 }
  0x76   : > { %3672 = vmatmul.mubr.msk.bf16.vlgmr.msra.gmra.mrb[12].mxu0 %vm272_vm2, %v4349_v46  ;;  %3690 = vmatmul.mubr.msk.bf16.vlgmr.msra.gmra.mrb[12].mxu1 %vm272_vm2, %v4317_v32  ;;  %v4062_v32 = vld [vmem:[%s5097_s1 + $0xc8] sm:$0xff]   ;;  %v4592_v46 = vld [vmem:[%s4249_s6 + $0x18] sm:$0xf] }
  0x77   : > { %3694 = vmatpush3.bf16.msra.mxu0 %v4053_v23  ;;  %3712 = vmatpush3.bf16.msra.mxu1 %v4054_v24  ;;  %v3104_v51 = vcombine.low %v4592_v46, %v2867_v48  ;;  %v4104_v23 = vld [vmem:[%s5097_s1 + $0x90] sm:$0xff]   ;;  %v4105_v24 = vld [vmem:[%s5097_s1 + $0xc8] sm:$0xff]  }
  0x78   : > { %3695 = vmatprep.subr.bf16.mxu0 %v4176_v1  ;;  %3713 = vmatprep.subr.bf16.mxu1 %v4176_v1 }
  0x79   : > { %3707 = vmatprep.mubr.msk.bf16.mxu0 %vm4177_vm0, %v4176_v1  ;;  %3725 = vmatprep.mubr.msk.bf16.mxu1 %vm4177_vm0, %v4176_v1  ;;  %v1400_v56 = vshll.u32 %v3104_v51, 16  ;;  %v1398_v59 = vshrl.u32 %v3104_v51, 16  ;;  %v4120_v51 = vld [vmem:[%s5097_s1 + $0x108] sm:$0xff]  }
  0x7b   : > { %3696 = vmatpush3.bf16.msra.mxu0 %v4055_v25  ;;  %3714 = vmatpush3.bf16.msra.mxu1 %v4056_v26  ;;  %v1402_v60 = vrot.slane %v1400_v56, 1  ;;  %v4106_v25 = vld [vmem:[%s5097_s1 + $0x98] sm:$0xff]   ;;  %v4107_v26 = vld [vmem:[%s5097_s1 + $0xd0] sm:$0xff]   ;;  %v4121_v56 = vld [vmem:[%s5097_s1 + $0x140] sm:$0xff]  }
  0x7c   : > { %3697 = vmatprep.subr.bf16.mxu0 %v4176_v1  ;;  %3715 = vmatprep.subr.bf16.mxu1 %v4176_v1 }
  0x7d   : > { %v4627_v62 = vor.u32 %v1402_v60, %v1398_v59  ;;  %v4123_v59 = vld [vmem:[%s5097_s1 + $0x148] sm:$0x3f]  }
  0x7f   : > { %3698 = vmatpush3.bf16.msra.mxu0 %v4057_v27  ;;  %3716 = vmatpush3.bf16.msra.mxu1 %v4058_v28  ;;  %v4108_v27 = vld [vmem:[%s5097_s1 + $0xa0] sm:$0x3f]   ;;  %v4109_v28 = vld [vmem:[%s5097_s1 + $0xd8] sm:$0x3f]  }
  0x80   : > { %3699 = vmatprep.subr.bf16.mxu0 %v4176_v1  ;;  %3717 = vmatprep.subr.bf16.mxu1 %v4176_v1 }
  0x83   : > { %3700 = vmatpush3.bf16.msra.mxu0 %v4059_v29  ;;  %3718 = vmatpush3.bf16.msra.mxu1 %v4060_v30  ;;  %v1773_v29 = vsel %vm276_vm1, %v4108_v27, 0  ;;  %v1872_v30 = vsel %vm276_vm1, %v4109_v28, 0  ;;  %v4139_v28 = vld [vmem:[%s5097_s1 + $0x70] sm:$0xff]  }
  0x84   : > { %3701 = vmatprep.subr.bf16.mxu0 %v4176_v1  ;;  %3719 = vmatprep.subr.bf16.mxu1 %v4176_v1 }
  0x87   : > { %3702 = vmatpush3.bf16.msra.mxu0 %v4061_v31  ;;  %3720 = vmatpush3.bf16.msra.mxu1 %v4062_v32  ;;  %v4110_v31 = vld [vmem:[%s5097_s1 + $0xe0] sm:$0xff]   ;;  %v4111_v32 = vld [vmem:[%s5097_s1 + $0x118] sm:$0xff]  }
  0x88   : > { %3703 = vmatprep.subr.bf16.mxu0 %v4176_v1  ;;  %3721 = vmatprep.subr.bf16.mxu1 %v4176_v1 }
  0x8b   : > { %3704 = vmatpush3.bf16.msra.mxu0 %v4063_v33  ;;  %3722 = vmatpush3.bf16.msra.mxu1 %v4064_v34  ;;  %v4112_v33 = vld [vmem:[%s5097_s1 + $0xe8] sm:$0xff]   ;;  %v4113_v34 = vld [vmem:[%s5097_s1 + $0x120] sm:$0xff]  }
  0x8c   : > { %3705 = vmatprep.subr.bf16.mxu0 %v4176_v1  ;;  %3723 = vmatprep.subr.bf16.mxu1 %v4176_v1 }
  0x8f   : > { %3706 = vmatpush3.bf16.msra.mxu0 %v1134_v37  ;;  %3724 = vmatpush3.bf16.msra.mxu1 %v1233_v38  ;;  %v4116_v37 = vld [vmem:[%s5097_s1 + $0xf8] sm:$0xff]   ;;  %v4117_v38 = vld [vmem:[%s5097_s1 + $0x130] sm:$0xff]  }
  0x90   : > { %3729 = vmatprep.subr.bf16.mxu0 %v4176_v1  ;;  %3747 = vmatprep.subr.bf16.mxu1 %v4176_v1 }
  0x92   : > { %3708 = vmatmul.mubr.msk.bf16.vlgmr.msra.gmra.mrb[16].mxu0 %vm272_vm2, %v4390_v55  ;;  %3726 = vmatmul.mubr.msk.bf16.vlgmr.msra.gmra.mrb[16].mxu1 %vm272_vm2, %v4422_v6 }
  0x93   : > { %3730 = vmatpush3.bf16.msra.mxu0 %v4067_v39  ;;  %3748 = vmatpush3.bf16.msra.mxu1 %v4068_v40  ;;  %v4801_v39 = vld [vmem:[%s4249_s6 + $0x20] sm:$0xf]  ;;  %v2869_v40 = vld [vmem:[%s4249_s6 + $0x24] sm:$0x1] }
  0x94   : > { %3731 = vmatprep.subr.bf16.mxu0 %v4176_v1  ;;  %3749 = vmatprep.subr.bf16.mxu1 %v4176_v1 }
  0x95   : > { %3743 = vmatprep.mubr.msk.bf16.mxu0 %vm4177_vm0, %v4176_v1  ;;  %3761 = vmatprep.mubr.msk.bf16.mxu1 %vm4177_vm0, %v4176_v1 }
  0x97   : > { %3732 = vmatpush3.bf16.msra.mxu0 %v4069_v41  ;;  %3750 = vmatpush3.bf16.msra.mxu1 %v4070_v42  ;;  %v4118_v41 = vld [vmem:[%s5097_s1 + $0x100] sm:$0xff]   ;;  %v3224_v42 = vcombine.low %v4801_v39, %v2869_v40 }
  0x98   : > { %3733 = vmatprep.subr.bf16.mxu0 %v4176_v1  ;;  %3751 = vmatprep.subr.bf16.mxu1 %v4176_v1 }
  0x99   : > { %v2037_v60 = vshrl.u32 %v3224_v42, 16 }
  0x9b   : > { %3734 = vmatpush3.bf16.msra.mxu0 %v4071_v43  ;;  %3752 = vmatpush3.bf16.msra.mxu1 %v4072_v44  ;;  %v4119_v43 = vld [vmem:[%s5097_s1 + $0x138] sm:$0xff]  }
  0x9c   : > { %3735 = vmatprep.subr.bf16.mxu0 %v4176_v1  ;;  %3753 = vmatprep.subr.bf16.mxu1 %v4176_v1 }
  0x9f   : > { %3736 = vmatpush3.bf16.msra.mxu0 %v4073_v45  ;;  %3754 = vmatpush3.bf16.msra.mxu1 %v4074_v47 }
  0xa0   : > { %3737 = vmatprep.subr.bf16.mxu0 %v4176_v1  ;;  %3755 = vmatprep.subr.bf16.mxu1 %v4176_v1 }
  0xa3   : > { %3738 = vmatpush3.bf16.msra.mxu0 %v4075_v49  ;;  %3756 = vmatpush3.bf16.msra.mxu1 %v4076_v50 }
  0xa4   : > { %3739 = vmatprep.subr.bf16.mxu0 %v4176_v1  ;;  %3757 = vmatprep.subr.bf16.mxu1 %v4176_v1 }
  0xa7   : > { %3740 = vmatpush3.bf16.msra.mxu0 %v4077_v52  ;;  %3758 = vmatpush3.bf16.msra.mxu1 %v4078_v54  ;;  %v2039_v52 = vshll.u32 %v3224_v42, 16 }
  0xa8   : > { %3741 = vmatprep.subr.bf16.mxu0 %v4176_v1  ;;  %3759 = vmatprep.subr.bf16.mxu1 %v4176_v1 }
  0xab   : > { %3742 = vmatpush3.bf16.msra.mxu0 %v1335_v58  ;;  %3760 = vmatpush3.bf16.msra.mxu1 %v1449_v61  ;;  %v2041_v61 = vrot.slane %v2039_v52, 1  ;;  %v4152_v52 = vld [vmem:[%s5097_s1 + $0xd8] sm:$0x3f]  }
  0xac   : > { %3765 = vmatprep.subr.bf16.mxu0 %v4176_v1  ;;  %3783 = vmatprep.subr.bf16.mxu1 %v4176_v1 }
  0xae   : > { %3744 = vmatmul.mubr.msk.bf16.vlgmr.msra.gmra.mrb[20].mxu0 %vm272_vm2, %v4592_v46  ;;  %3762 = vmatmul.mubr.msk.bf16.vlgmr.msra.gmra.mrb[20].mxu1 %vm272_vm2, %v4627_v62 }
  0xaf   : > { %3766 = vmatpush3.bf16.msra.mxu0 %v4082_v63  ;;  %3784 = vmatpush3.bf16.msra.mxu1 %v4083_v0  ;;  %v1974_v63 = vsel %vm276_vm1, %v4122_v57, 0  ;;  %v2088_v0 = vsel %vm276_vm1, %v4123_v59, 0  ;;  %v2511_v57 = vsel %vm276_vm1, %v4152_v52, 0  ;;  %v4154_v59 = vld [vmem:[%s5097_s1 + $0x118] sm:$0xff]  }
  0xb0   : > { %3767 = vmatprep.subr.bf16.mxu0 %v4176_v1  ;;  %3785 = vmatprep.subr.bf16.mxu1 %v4176_v1 }
  0xb1   : > { %3779 = vmatprep.mubr.msk.bf16.mxu0 %vm4177_vm0, %v4176_v1  ;;  %3797 = vmatprep.mubr.msk.bf16.mxu1 %vm4177_vm0, %v4176_v1 }
  0xb3   : > { %3768 = vmatpush3.bf16.msra.mxu0 %v4084_v2  ;;  %3786 = vmatpush3.bf16.msra.mxu1 %v4085_v3  ;;  %v4832_v2 = vor.u32 %v2041_v61, %v2037_v60  ;;  %v4125_v3 = vld [vmem:[%s5097_s1 + $0x38] sm:$0xff]   ;;  %v4155_v60 = vld [vmem:[%s5097_s1 + $0xe8] sm:$0xff]   ;;  %v4157_v61 = vld [vmem:[%s5097_s1 + $0xf0] sm:$0xff]  }
  0xb4   : > { %3769 = vmatprep.subr.bf16.mxu0 %v4176_v1  ;;  %3787 = vmatprep.subr.bf16.mxu1 %v4176_v1 }
  0xb7   : > { %3770 = vmatpush3.bf16.msra.mxu0 %v4086_v4  ;;  %3788 = vmatpush3.bf16.msra.mxu1 %v4087_v5  ;;  %v4126_v4 = vld [vmem:[%s5097_s1] sm:$0xff]  }
  0xb8   : > { %3771 = vmatprep.subr.bf16.mxu0 %v4176_v1  ;;  %3789 = vmatprep.subr.bf16.mxu1 %v4176_v1  ;;  %v4127_v5 = vld [vmem:[%s5097_s1 + $0x40] sm:$0xff]  }
  0xbb   : > { %3772 = vmatpush3.bf16.msra.mxu0 %v4088_v7  ;;  %3790 = vmatpush3.bf16.msra.mxu1 %v4089_v8  ;;  %v4128_v7 = vld [vmem:[%s5097_s1 + $0x8] sm:$0xff]  }
  0xbc   : > { %3773 = vmatprep.subr.bf16.mxu0 %v4176_v1  ;;  %3791 = vmatprep.subr.bf16.mxu1 %v4176_v1  ;;  %v4129_v8 = vld [vmem:[%s5097_s1 + $0x48] sm:$0xff]  }
  0xbf   : > { %3774 = vmatpush3.bf16.msra.mxu0 %v4090_v9  ;;  %3792 = vmatpush3.bf16.msra.mxu1 %v4091_v10  ;;  %v4130_v9 = vld [vmem:[%s5097_s1 + $0x10] sm:$0xff]  }
  0xc0   : > { %3775 = vmatprep.subr.bf16.mxu0 %v4176_v1  ;;  %3793 = vmatprep.subr.bf16.mxu1 %v4176_v1  ;;  %v4131_v10 = vld [vmem:[%s5097_s1 + $0x50] sm:$0xff]  }
  0xc3   : > { %3776 = vmatpush3.bf16.msra.mxu0 %v4092_v11  ;;  %3794 = vmatpush3.bf16.msra.mxu1 %v4093_v12  ;;  %v4132_v11 = vld [vmem:[%s5097_s1 + $0x18] sm:$0xff]  }
  0xc4   : > { %3777 = vmatprep.subr.bf16.mxu0 %v4176_v1  ;;  %3795 = vmatprep.subr.bf16.mxu1 %v4176_v1  ;;  %v4133_v12 = vld [vmem:[%s5097_s1 + $0x58] sm:$0xff]  }
  0xc7   : > { %3778 = vmatpush3.bf16.msra.mxu0 %v1591_v15  ;;  %3796 = vmatpush3.bf16.msra.mxu1 %v1675_v16 }
  0xc8   : > { %3801 = vmatprep.subr.bf16.mxu0 %v4176_v1  ;;  %3819 = vmatprep.subr.bf16.mxu1 %v4176_v1 }
  0xca   : > { %3780 = vmatmul.mubr.msk.bf16.vlgmr.msra.gmra.mrb[24].mxu0 %vm272_vm2, %v4422_v6  ;;  %3798 = vmatmul.mubr.msk.bf16.vlgmr.msra.gmra.mrb[24].mxu1 %vm272_vm2, %v4390_v55  ;;  %v4100_v55 = vld [vmem:[%s5097_s1 + $0x80] sm:$0xff]   ;;  %v4101_v6 = vld [vmem:[%s5097_s1 + $0xb8] sm:$0xff]  }
  0xcb   : > { %3802 = vmatpush3.bf16.msra.mxu0 %v4096_v17  ;;  %3820 = vmatpush3.bf16.msra.mxu1 %v4097_v18 }
  0xcc   : > { %3803 = vmatprep.subr.bf16.mxu0 %v4176_v1  ;;  %3821 = vmatprep.subr.bf16.mxu1 %v4176_v1 }
  0xcd   : > { %3815 = vmatprep.mubr.msk.bf16.mxu0 %vm4177_vm0, %v4176_v1  ;;  %3833 = vmatprep.mubr.msk.bf16.mxu1 %vm4177_vm0, %v4176_v1 }
  0xcf   : > { %3804 = vmatpush3.bf16.msra.mxu0 %v4098_v19  ;;  %3822 = vmatpush3.bf16.msra.mxu1 %v4099_v20  ;;  %v4135_v20 = vld [vmem:[%s5097_s1 + $0x60] sm:$0xff]  }
  0xd0   : > { %3805 = vmatprep.subr.bf16.mxu0 %v4176_v1  ;;  %3823 = vmatprep.subr.bf16.mxu1 %v4176_v1 }
  0xd3   : > { %3806 = vmatpush3.bf16.msra.mxu0 %v4100_v55  ;;  %3824 = vmatpush3.bf16.msra.mxu1 %v4101_v6 }
  0xd4   : > { %3807 = vmatprep.subr.bf16.mxu0 %v4176_v1  ;;  %3825 = vmatprep.subr.bf16.mxu1 %v4176_v1 }
  0xd7   : > { %3808 = vmatpush3.bf16.msra.mxu0 %v4102_v21  ;;  %3826 = vmatpush3.bf16.msra.mxu1 %v4103_v22  ;;  %v4136_v22 = vld [vmem:[%s5097_s1 + $0x28] sm:$0xff]  }
  0xd8   : > { %3809 = vmatprep.subr.bf16.mxu0 %v4176_v1  ;;  %3827 = vmatprep.subr.bf16.mxu1 %v4176_v1 }
  0xdb   : > { %3810 = vmatpush3.bf16.msra.mxu0 %v4104_v23  ;;  %3828 = vmatpush3.bf16.msra.mxu1 %v4105_v24  ;;  %v4137_v23 = vld [vmem:[%s5097_s1 + $0x68] sm:$0x3f]  }
  0xdc   : > { %3811 = vmatprep.subr.bf16.mxu0 %v4176_v1  ;;  %3829 = vmatprep.subr.bf16.mxu1 %v4176_v1 }
  0xdf   : > { %3812 = vmatpush3.bf16.msra.mxu0 %v4106_v25  ;;  %3830 = vmatpush3.bf16.msra.mxu1 %v4107_v26  ;;  %v4138_v25 = vld [vmem:[%s5097_s1 + $0x30] sm:$0x3f]   ;;  %v2230_v26 = vsel %vm276_vm1, %v4137_v23, 0 }
  0xe0   : > { %3813 = vmatprep.subr.bf16.mxu0 %v4176_v1  ;;  %3831 = vmatprep.subr.bf16.mxu1 %v4176_v1  ;;  %v2314_v27 = vsel %vm276_vm1, %v4138_v25, 0 }
  0xe3   : > { %3814 = vmatpush3.bf16.msra.mxu0 %v1773_v29  ;;  %3832 = vmatpush3.bf16.msra.mxu1 %v1872_v30  ;;  %v4140_v29 = vld [vmem:[%s5097_s1 + $0xa8] sm:$0xff]   ;;  %v4141_v30 = vld [vmem:[%s5097_s1 + $0x78] sm:$0xff]  }
  0xe4   : > { %3837 = vmatprep.subr.bf16.mxu0 %v4176_v1  ;;  %3855 = vmatprep.subr.bf16.mxu1 %v4176_v1 }
  0xe6   : > { %3816 = vmatmul.mubr.msk.bf16.vlgmr.msra.gmra.mrb[28].mxu0 %vm272_vm2, %v4592_v46  ;;  %3834 = vmatmul.mubr.msk.bf16.vlgmr.msra.gmra.mrb[28].mxu1 %vm272_vm2, %v4627_v62 }
  0xe7   : > { %3838 = vmatpush3.bf16.msra.mxu0 %v4110_v31  ;;  %3856 = vmatpush3.bf16.msra.mxu1 %v4111_v32  ;;  %v4142_v31 = vld [vmem:[%s5097_s1 + $0xb0] sm:$0xff]   ;;  %v4145_v32 = vld [vmem:[%s5097_s1 + $0x88] sm:$0xff]  }
  0xe8   : > { %3839 = vmatprep.subr.bf16.mxu0 %v4176_v1  ;;  %3857 = vmatprep.subr.bf16.mxu1 %v4176_v1 }
  0xe9   : > { %3851 = vmatprep.mubr.msk.bf16.mxu0 %vm4177_vm0, %v4176_v1  ;;  %3869 = vmatprep.mubr.msk.bf16.mxu1 %vm4177_vm0, %v4176_v1 }
  0xeb   : > { %3840 = vmatpush3.bf16.msra.mxu0 %v4112_v33  ;;  %3858 = vmatpush3.bf16.msra.mxu1 %v4113_v34  ;;  %v4146_v33 = vld [vmem:[%s5097_s1 + $0xc0] sm:$0xff]   ;;  %v4147_v34 = vld [vmem:[%s5097_s1 + $0x90] sm:$0xff]  }
  0xec   : > { %3841 = vmatprep.subr.bf16.mxu0 %v4176_v1  ;;  %3859 = vmatprep.subr.bf16.mxu1 %v4176_v1 }
  0xef   : > { %3842 = vmatpush3.bf16.msra.mxu0 %v4114_v35  ;;  %3860 = vmatpush3.bf16.msra.mxu1 %v4115_v36  ;;  %v4148_v35 = vld [vmem:[%s5097_s1 + $0xc8] sm:$0xff]  }
  0xf0   : > { %3843 = vmatprep.subr.bf16.mxu0 %v4176_v1  ;;  %3861 = vmatprep.subr.bf16.mxu1 %v4176_v1 }
  0xf3   : > { %3844 = vmatpush3.bf16.msra.mxu0 %v4116_v37  ;;  %3862 = vmatpush3.bf16.msra.mxu1 %v4117_v38 }
  0xf4   : > { %3845 = vmatprep.subr.bf16.mxu0 %v4176_v1  ;;  %3863 = vmatprep.subr.bf16.mxu1 %v4176_v1 }
  0xf5   : > { %v314_v44 = vpop.f32.mrb[0].mxu0  ;;  %v401_v45 = vpop.f32.mrb[0].mxu1 }
  0xf6   : > { %v3565_v47 = vpop.f32.mrb[1].mxu0  ;;  %v402_v48 = vadd.f32 %v401_v45, %v314_v44  ;;  %v3583_v49 = vpop.f32.mrb[1].mxu1  ;;  %v4149_v44 = vld [vmem:[%s5097_s1 + $0x98] sm:$0xff]  }
  0xf7   : > { %v317_v50 = vpop.f32.mrb[2].mxu0  ;;  %3846 = vmatpush3.bf16.msra.mxu0 %v4118_v41  ;;  %v404_v53 = vpop.f32.mrb[2].mxu1  ;;  %3864 = vmatpush3.bf16.msra.mxu1 %v4119_v43  ;;  %v4951_v41 = vld [vmem:[%s5098_s2] ss:$0 sm:$0xff]  ;;  %v4150_v49 = vld [vmem:[%s5097_s1 + $0xd0] sm:$0xff]  }
  0xf8   : > { %v3566_v54 = vpop.f32.mrb[3].mxu0  ;;  %3847 = vmatprep.subr.bf16.mxu0 %v4176_v1  ;;  %v3584_v58 = vpop.f32.mrb[3].mxu1  ;;  %3865 = vmatprep.subr.bf16.mxu1 %v4176_v1  ;;  %v4151_v50 = vld [vmem:[%s5097_s1 + $0xa0] sm:$0x3f]  }
  0xf9   : > { %v4153_v58 = vld [vmem:[%s5097_s1 + $0xe0] sm:$0xff]  }
  0xfb   : > { %3848 = vmatpush3.bf16.msra.mxu0 %v4120_v51  ;;  %3866 = vmatpush3.bf16.msra.mxu1 %v4121_v56  ;;  %v2412_v56 = vsel %vm276_vm1, %v4151_v50, 0 }
  0xfc   : > { %3849 = vmatprep.subr.bf16.mxu0 %v4176_v1  ;;  %3867 = vmatprep.subr.bf16.mxu1 %v4176_v1 }
  0xff   : > { %3850 = vmatpush3.bf16.msra.mxu0 %v1974_v63  ;;  %3868 = vmatpush3.bf16.msra.mxu1 %v2088_v0  ;;  %v4158_v63 = vld [vmem:[%s5097_s1 + $0x128] sm:$0xff]   ;;  %v4159_v0 = vld [vmem:[%s5097_s1 + $0xf8] sm:$0xff]  }
 0x100   : > { %3873 = vmatprep.subr.bf16.mxu0 %v4176_v1  ;;  %3891 = vmatprep.subr.bf16.mxu1 %v4176_v1 }
 0x102   : > { %3852 = vmatmul.mubr.msk.bf16.vlgmr.msra.gmra.mrb[32].mxu0 %vm272_vm2, %v4801_v39  ;;  %3870 = vmatmul.mubr.msk.bf16.vlgmr.msra.gmra.mrb[32].mxu1 %vm272_vm2, %v4832_v2 }
 0x103   : > { %3874 = vmatpush3.bf16.msra.mxu0 %v4125_v3  ;;  %3892 = vmatpush3.bf16.msra.mxu1 %v4126_v4  ;;  %v2870_v3 = vld [vmem:[%s4249_s6 + $0x28] sm:$0xf]  ;;  %v2871_v4 = vld [vmem:[%s4249_s6 + $0x2c] sm:$0x1] }
 0x104   : > { %3875 = vmatprep.subr.bf16.mxu0 %v4176_v1  ;;  %3893 = vmatprep.subr.bf16.mxu1 %v4176_v1 }
 0x105   : > { %3887 = vmatprep.mubr.msk.bf16.mxu0 %vm4177_vm0, %v4176_v1  ;;  %3905 = vmatprep.mubr.msk.bf16.mxu1 %vm4177_vm0, %v4176_v1 }
 0x107   : > { %3876 = vmatpush3.bf16.msra.mxu0 %v4127_v5  ;;  %3894 = vmatpush3.bf16.msra.mxu1 %v4128_v7  ;;  %v4161_v5 = vld [vmem:[%s5097_s1 + $0x100] sm:$0xff]   ;;  %v3344_v7 = vcombine.low %v2870_v3, %v2871_v4 }
 0x108   : > { %3877 = vmatprep.subr.bf16.mxu0 %v4176_v1  ;;  %3895 = vmatprep.subr.bf16.mxu1 %v4176_v1 }
 0x10b   : > { %3878 = vmatpush3.bf16.msra.mxu0 %v4129_v8  ;;  %3896 = vmatpush3.bf16.msra.mxu1 %v4130_v9  ;;  %v4162_v8 = vld [vmem:[%s5097_s1 + $0x138] sm:$0xff]  }
 0x10c   : > { %3879 = vmatprep.subr.bf16.mxu0 %v4176_v1  ;;  %3897 = vmatprep.subr.bf16.mxu1 %v4176_v1 }
 0x10f   : > { %3880 = vmatpush3.bf16.msra.mxu0 %v4131_v10  ;;  %3898 = vmatpush3.bf16.msra.mxu1 %v4132_v11 }
 0x110   : > { %3881 = vmatprep.subr.bf16.mxu0 %v4176_v1  ;;  %3899 = vmatprep.subr.bf16.mxu1 %v4176_v1 }
 0x111   : > { %v503_v14 = vpop.f32.mrb[4].mxu0  ;;  %v618_v16 = vpop.f32.mrb[4].mxu1 }
 0x112   : > { %v509_v15 = vadd.f32 %v503_v14, %v402_v48  ;;  %v3601_v17 = vpop.f32.mrb[5].mxu0  ;;  %v3619_v18 = vpop.f32.mrb[5].mxu1 }
 0x113   : > { %v506_v19 = vpop.f32.mrb[6].mxu0  ;;  %3882 = vmatpush3.bf16.msra.mxu0 %v4133_v12  ;;  %v621_v6 = vpop.f32.mrb[6].mxu1  ;;  %3900 = vmatpush3.bf16.msra.mxu1 %v4134_v13 }
 0x114   : > { %v624_v55 = vadd.f32 %v618_v16, %v509_v15  ;;  %v3602_v21 = vpop.f32.mrb[7].mxu0  ;;  %3883 = vmatprep.subr.bf16.mxu0 %v4176_v1  ;;  %v3620_v24 = vpop.f32.mrb[7].mxu1  ;;  %3901 = vmatprep.subr.bf16.mxu1 %v4176_v1  ;;  %v4163_v15 = vld [vmem:[%s5097_s1 + $0x108] sm:$0xff]   ;;  %v2678_v16 = vshll.u32 %v3344_v7, 16  ;;  %v4164_v19 = vld [vmem:[%s5097_s1 + $0x140] sm:$0xff]  }
 0x115   : > { %v4166_v6 = vld [vmem:[%s5097_s1 + $0x148] sm:$0x3f]   ;;  %v2676_v21 = vshrl.u32 %v3344_v7, 16 }
 0x116   : > { %v2727_v24 = vsel %vm276_vm1, %v4166_v6, 0 }
 0x117   : > { %3884 = vmatpush3.bf16.msra.mxu0 %v4135_v20  ;;  %3902 = vmatpush3.bf16.msra.mxu1 %v4136_v22  ;;  %v4165_v20 = vld [vmem:[%s5097_s1 + $0x110] sm:$0x3f]   ;;  %v2680_v22 = vrot.slane %v2678_v16, 1 }
 0x118   : > { %3885 = vmatprep.subr.bf16.mxu0 %v4176_v1  ;;  %3903 = vmatprep.subr.bf16.mxu1 %v4176_v1  ;;  %v2613_v23 = vsel %vm276_vm1, %v4165_v20, 0 }
 0x119   : > { %v2681_v25 = vor.u32 %v2680_v22, %v2676_v21 }
 0x11b   : > { %3886 = vmatpush3.bf16.msra.mxu0 %v2230_v26  ;;  %3904 = vmatpush3.bf16.msra.mxu1 %v2314_v27 }
 0x11c   : > { %3909 = vmatprep.subr.bf16.mxu0 %v4176_v1  ;;  %3927 = vmatprep.subr.bf16.mxu1 %v4176_v1 }
 0x11e   : > { %3888 = vmatmul.mubr.msk.bf16.vlgmr.msra.gmra.mrb[36].mxu0 %vm272_vm2, %v4627_v62  ;;  %3906 = vmatmul.mubr.msk.bf16.vlgmr.msra.gmra.mrb[36].mxu1 %vm272_vm2, %v4592_v46  ;;  %v4143_v46 = vld [vmem:[%s5097_s1 + $0x80] sm:$0xff]   ;;  %v4144_v62 = vld [vmem:[%s5097_s1 + $0xb8] sm:$0xff]  }
 0x11f   : > { %3910 = vmatpush3.bf16.msra.mxu0 %v4139_v28  ;;  %3928 = vmatpush3.bf16.msra.mxu1 %v4140_v29 }
 0x120   : > { %3911 = vmatprep.subr.bf16.mxu0 %v4176_v1  ;;  %3929 = vmatprep.subr.bf16.mxu1 %v4176_v1 }
 0x121   : > { %3923 = vmatprep.mubr.msk.bf16.mxu0 %vm4177_vm0, %v4176_v1  ;;  %3941 = vmatprep.mubr.msk.bf16.mxu1 %vm4177_vm0, %v4176_v1 }
 0x123   : > { %3912 = vmatpush3.bf16.msra.mxu0 %v4141_v30  ;;  %3930 = vmatpush3.bf16.msra.mxu1 %v4142_v31 }
 0x124   : > { %3913 = vmatprep.subr.bf16.mxu0 %v4176_v1  ;;  %3931 = vmatprep.subr.bf16.mxu1 %v4176_v1 }
 0x127   : > { %3914 = vmatpush3.bf16.msra.mxu0 %v4143_v46  ;;  %3932 = vmatpush3.bf16.msra.mxu1 %v4144_v62 }
 0x128   : > { %3915 = vmatprep.subr.bf16.mxu0 %v4176_v1  ;;  %3933 = vmatprep.subr.bf16.mxu1 %v4176_v1 }
 0x12b   : > { %3916 = vmatpush3.bf16.msra.mxu0 %v4145_v32  ;;  %3934 = vmatpush3.bf16.msra.mxu1 %v4146_v33 }
 0x12c   : > { %3917 = vmatprep.subr.bf16.mxu0 %v4176_v1  ;;  %3935 = vmatprep.subr.bf16.mxu1 %v4176_v1 }
 0x12d   : > { %v721_v36 = vpop.f32.mrb[8].mxu0  ;;  %v836_v38 = vpop.f32.mrb[8].mxu1 }
 0x12e   : > { %v727_v37 = vadd.f32 %v721_v36, %v624_v55  ;;  %v3637_v40 = vpop.f32.mrb[9].mxu0  ;;  %v3655_v42 = vpop.f32.mrb[9].mxu1 }
 0x12f   : > { %v724_v43 = vpop.f32.mrb[10].mxu0  ;;  %3918 = vmatpush3.bf16.msra.mxu0 %v4147_v34  ;;  %v839_v47 = vpop.f32.mrb[10].mxu1  ;;  %3936 = vmatpush3.bf16.msra.mxu1 %v4148_v35 }
 0x130   : > { %v842_v45 = vadd.f32 %v836_v38, %v727_v37  ;;  %v3638_v48 = vpop.f32.mrb[11].mxu0  ;;  %3919 = vmatprep.subr.bf16.mxu0 %v4176_v1  ;;  %v3656_v51 = vpop.f32.mrb[11].mxu1  ;;  %3937 = vmatprep.subr.bf16.mxu1 %v4176_v1 }
 0x132   : > { %v849_v53 = vadd.f32 %v4951_v41, %v842_v45 }
 0x133   : > { %3920 = vmatpush3.bf16.msra.mxu0 %v4149_v44  ;;  %3938 = vmatpush3.bf16.msra.mxu1 %v4150_v49 }
 0x134   : > { %v4968_v54 = vmax.f32 %v849_v53, 0.0  ;;  %3921 = vmatprep.subr.bf16.mxu0 %v4176_v1  ;;  %3939 = vmatprep.subr.bf16.mxu1 %v4176_v1 }
 0x136   : > { %857 = vrot.lane.b32.xlu0 %v4968_v54, %s4178_s15 }
 0x137   : > { %3922 = vmatpush3.bf16.msra.mxu0 %v2412_v56  ;;  %3940 = vmatpush3.bf16.msra.mxu1 %v2511_v57 }
 0x138   : > { %3945 = vmatprep.subr.bf16.mxu0 %v4176_v1  ;;  %3963 = vmatprep.subr.bf16.mxu1 %v4176_v1 }
 0x13a   : > { %3924 = vmatmul.mubr.msk.bf16.vlgmr.msra.gmra.mrb[40].mxu0 %vm272_vm2, %v4801_v39  ;;  %852 = vrot.lane.b32.xlu0 %v4968_v54, %s4179_s20  ;;  %v4156_v39 = vld [vmem:[%s5097_s1 + $0x120] sm:$0xff]  }
 0x13b   : > { %3942 = vmatmul.mubr.msk.bf16.vlgmr.msra.gmra.mrb[40].mxu1 %vm272_vm2, %v4832_v2  ;;  %3946 = vmatpush3.bf16.msra.mxu0 %v4153_v58  ;;  %v4160_v2 = vld [vmem:[%s5097_s1 + $0x130] sm:$0xff]  }
 0x13c   : > { %3964 = vmatpush3.bf16.msra.mxu1 %v4154_v59  ;;  %3947 = vmatprep.subr.bf16.mxu0 %v4176_v1 }
 0x13d   : > { %3965 = vmatprep.subr.bf16.mxu1 %v4176_v1  ;;  %3959 = vmatprep.mubr.msk.bf16.mxu0 %vm4177_vm0, %v4176_v1 }
 0x13e   : > { %3977 = vmatprep.mubr.msk.bf16.mxu1 %vm4177_vm0, %v4176_v1 }
 0x13f   : > { %3948 = vmatpush3.bf16.msra.mxu0 %v4155_v60 }
 0x140   : > { %3966 = vmatpush3.bf16.msra.mxu1 %v4156_v39  ;;  %3949 = vmatprep.subr.bf16.mxu0 %v4176_v1 }
 0x141   : > { %3967 = vmatprep.subr.bf16.mxu1 %v4176_v1 }
 0x143   : > { %3950 = vmatpush3.bf16.msra.mxu0 %v4157_v61 }
 0x144   : > { %3968 = vmatpush3.bf16.msra.mxu1 %v4158_v63  ;;  %3951 = vmatprep.subr.bf16.mxu0 %v4176_v1 }
 0x145   : > { %3969 = vmatprep.subr.bf16.mxu1 %v4176_v1 }
 0x147   : > { %3952 = vmatpush3.bf16.msra.mxu0 %v4159_v0 }
 0x148   : > { %3970 = vmatpush3.bf16.msra.mxu1 %v4160_v2  ;;  %3953 = vmatprep.subr.bf16.mxu0 %v4176_v1 }
 0x149   : > { %v988_v9 = vpop.f32.mrb[12].mxu0  ;;  %3971 = vmatprep.subr.bf16.mxu1 %v4176_v1  ;;  %v1072_v10 = vpop.f32.mrb[12].mxu1 }
 0x14a   : > { %v3673_v11 = vpop.f32.mrb[13].mxu0  ;;  %v1073_v12 = vadd.f32 %v1072_v10, %v988_v9  ;;  %v3691_v13 = vpop.f32.mrb[13].mxu1 }
 0x14b   : > { %v991_v14 = vpop.f32.mrb[14].mxu0  ;;  %3954 = vmatpush3.bf16.msra.mxu0 %v4161_v5  ;;  %v1075_v17 = vpop.f32.mrb[14].mxu1 }
 0x14c   : > { %3972 = vmatpush3.bf16.msra.mxu1 %v4162_v8  ;;  %v3674_v18 = vpop.f32.mrb[15].mxu0  ;;  %3955 = vmatprep.subr.bf16.mxu0 %v4176_v1  ;;  %v3692_v55 = vpop.f32.mrb[15].mxu1 }
 0x14d   : > { %3973 = vmatprep.subr.bf16.mxu1 %v4176_v1 }
 0x14f   : > { %3956 = vmatpush3.bf16.msra.mxu0 %v4163_v15 }
 0x150   : > { %3974 = vmatpush3.bf16.msra.mxu1 %v4164_v19  ;;  %3957 = vmatprep.subr.bf16.mxu0 %v4176_v1 }
 0x151   : > { %3975 = vmatprep.subr.bf16.mxu1 %v4176_v1 }
 0x153   : > { %3958 = vmatpush3.bf16.msra.mxu0 %v2613_v23 }
 0x154   : > { %3976 = vmatpush3.bf16.msra.mxu1 %v2727_v24 }
 0x156   : > { %3960 = vmatmul.mubr.msk.bf16.vlgmr.msra.gmra.mrb[44].mxu0 %vm272_vm2, %v2870_v3 }
 0x157   : > { %3978 = vmatmul.mubr.msk.bf16.vlgmr.msra.gmra.mrb[44].mxu1 %vm272_vm2, %v2681_v25 }
 0x165   : > { %v1170_v26 = vpop.f32.mrb[16].mxu0  ;;  %v1269_v28 = vpop.f32.mrb[16].mxu1 }
 0x166   : > { %v1176_v27 = vadd.f32 %v1170_v26, %v1073_v12  ;;  %v3709_v29 = vpop.f32.mrb[17].mxu0  ;;  %v3727_v30 = vpop.f32.mrb[17].mxu1 }
 0x167   : > { %v1173_v31 = vpop.f32.mrb[18].mxu0  ;;  %v1272_v62 = vpop.f32.mrb[18].mxu1 }
 0x168   : > { %v1275_v46 = vadd.f32 %v1269_v28, %v1176_v27  ;;  %v3710_v32 = vpop.f32.mrb[19].mxu0  ;;  %v3728_v33 = vpop.f32.mrb[19].mxu1 }
 0x181   : > { %v1371_v1 = vpop.f32.mrb[20].mxu0  ;;  %v1485_v35 = vpop.f32.mrb[20].mxu1 }
 0x182   : > { %v1377_v34 = vadd.f32 %v1371_v1, %v1275_v46  ;;  %v3745_v36 = vpop.f32.mrb[21].mxu0  ;;  %v3763_v37 = vpop.f32.mrb[21].mxu1 }
 0x183   : > { %v1374_v38 = vpop.f32.mrb[22].mxu0  ;;  %v1488_v42 = vpop.f32.mrb[22].mxu1 }
 0x184   : > { %v1491_v40 = vadd.f32 %v1485_v35, %v1377_v34  ;;  %v3746_v43 = vpop.f32.mrb[23].mxu0  ;;  %v3764_v44 = vpop.f32.mrb[23].mxu1 }
 0x186   : > { %v1492_v45 = vadd.f32 %v4951_v41, %v1491_v40 }
 0x188   : > { %v5049_v47 = vmax.f32 %v1492_v45, 0.0 }
 0x18a   : > { %1495 = vrot.lane.b32.xlu1 %v5049_v47, %s4179_s20  ;;  %1499 = vrot.lane.b32.xlu0 %v5049_v47, %s4178_s15 }
 0x19d   : > { %v1627_v48 = vpop.f32.mrb[24].mxu0  ;;  %v1711_v49 = vpop.f32.mrb[24].mxu1 }
 0x19e   : > { %v3781_v50 = vpop.f32.mrb[25].mxu0  ;;  %v1712_v51 = vadd.f32 %v1711_v49, %v1627_v48  ;;  %v3799_v52 = vpop.f32.mrb[25].mxu1 }
 0x19f   : > { %v1630_v53 = vpop.f32.mrb[26].mxu0  ;;  %v1714_v56 = vpop.f32.mrb[26].mxu1 }
 0x1a0   : > { %v3782_v57 = vpop.f32.mrb[27].mxu0  ;;  %v3800_v58 = vpop.f32.mrb[27].mxu1 }
 0x1a8   : > { %v858_v59 = vpop.permute.xlu0 %857 }
 0x1a9   : > { %v860_v60 = vmax.f32 %v4968_v54, %v858_v59 }
 0x1ac   : > { %v853_v39 = vpop.permute.xlu0 %852 }
 0x1ad   : > { %v856_v61 = vsel %vm855_vm3, 0.0, %v853_v39 }
 0x1ae   : > { %v861_v63 = vmax.f32 %v860_v60, %v856_v61 }
 0x1b0   : > { %v863_v0 = vrot.slane %v861_v63, 1  ;;  %v866_v3 = vrot.slane %v861_v63, 2 }
 0x1b2   : > { %v865_v2 = vmax.f32 %v861_v63, %v863_v0 }
 0x1b4   : > { %v868_v4 = vmax.f32 %v865_v2, %v866_v3 }
 0x1b6   : > { %v870_v5 = vrot.slane %v868_v4, 1  ;;  %v872_v7 = vrot.slane %v868_v4, 2  ;;  %v875_v8 = vsel %vm874_vm4, %v865_v2, %v868_v4 }
 0x1b8   : > { %v877_v54 = vsel %vm876_vm5, %v875_v8, %v870_v5 }
 0x1b9   : > { %v879_v9 = vsel %vm878_vm6, %v877_v54, %v872_v7  ;;  %v1809_v10 = vpop.f32.mrb[28].mxu0  ;;  %v1908_v12 = vpop.f32.mrb[28].mxu1 }
 0x1ba   : > { %881 = vst.msk [vmem:[%s5062_s25] sm:$0xf] %vm880_vm7, %v879_v9  ;;  %v1815_v11 = vadd.f32 %v1809_v10, %v1712_v51  ;;  %v3817_v13 = vpop.f32.mrb[29].mxu0  ;;  %v3835_v14 = vpop.f32.mrb[29].mxu1 }
 0x1bb   : > { %v1812_v15 = vpop.f32.mrb[30].mxu0  ;;  %v1911_v17 = vpop.f32.mrb[30].mxu1 }
 0x1bc   : > { %v1914_v16 = vadd.f32 %v1908_v12, %v1815_v11  ;;  %v3818_v18 = vpop.f32.mrb[31].mxu0  ;;  %v3836_v19 = vpop.f32.mrb[31].mxu1 }
 0x1d5   : > { %v2010_v20 = vpop.f32.mrb[32].mxu0  ;;  %v2124_v6 = vpop.f32.mrb[32].mxu1 }
 0x1d6   : > { %v2016_v55 = vadd.f32 %v2010_v20, %v1914_v16  ;;  %v3853_v21 = vpop.f32.mrb[33].mxu0  ;;  %v3871_v22 = vpop.f32.mrb[33].mxu1 }
 0x1d7   : > { %v2013_v23 = vpop.f32.mrb[34].mxu0  ;;  %v2127_v25 = vpop.f32.mrb[34].mxu1 }
 0x1d8   : > { %v2130_v24 = vadd.f32 %v2124_v6, %v2016_v55  ;;  %v3854_v26 = vpop.f32.mrb[35].mxu0  ;;  %v3872_v27 = vpop.f32.mrb[35].mxu1 }
 0x1da   : > { %v2131_v28 = vadd.f32 %v4951_v41, %v2130_v24 }
 0x1dc   : > { %v2132_v29 = vmax.f32 %v2131_v28, 0.0 }
 0x1de   : > { %2134 = vrot.lane.b32.xlu0 %v2132_v29, %s4179_s20  ;;  %2138 = vrot.lane.b32.xlu1 %v2132_v29, %s4178_s15 }
 0x1f1   : > { %v2266_v30 = vpop.f32.mrb[36].mxu0  ;;  %v2350_v31 = vpop.f32.mrb[36].mxu1 }
 0x1f2   : > { %v3889_v46 = vpop.f32.mrb[37].mxu0  ;;  %v2351_v62 = vadd.f32 %v2350_v31, %v2266_v30  ;;  %v3907_v32 = vpop.f32.mrb[37].mxu1 }
 0x1f3   : > { %v2269_v33 = vpop.f32.mrb[38].mxu0  ;;  %v2353_v1 = vpop.f32.mrb[38].mxu1 }
 0x1f4   : > { %v3890_v34 = vpop.f32.mrb[39].mxu0  ;;  %v3908_v35 = vpop.f32.mrb[39].mxu1 }
 0x1fc   : > { %v1496_v36 = vpop.permute.xlu1 %1495  ;;  %v1500_v37 = vpop.permute.xlu0 %1499 }
 0x1fd   : > { %v1498_v38 = vsel %vm855_vm3, 0.0, %v1496_v36  ;;  %v1502_v40 = vmax.f32 %v5049_v47, %v1500_v37 }
 0x1ff   : > { %v1503_v42 = vmax.f32 %v1502_v40, %v1498_v38 }
 0x201   : > { %v1505_v43 = vrot.slane %v1503_v42, 1  ;;  %v1508_v45 = vrot.slane %v1503_v42, 2 }
 0x203   : > { %v1507_v44 = vmax.f32 %v1503_v42, %v1505_v43 }
 0x205   : > { %v1510_v48 = vmax.f32 %v1507_v44, %v1508_v45 }
 0x207   : > { %v1512_v49 = vrot.slane %v1510_v48, 1  ;;  %v1514_v50 = vrot.slane %v1510_v48, 2  ;;  %v1516_v51 = vsel %vm874_vm4, %v1507_v44, %v1510_v48 }
 0x209   : > { %v1517_v52 = vsel %vm876_vm5, %v1516_v51, %v1512_v49 }
 0x20a   : > { %v1518_v53 = vsel %vm878_vm6, %v1517_v52, %v1514_v50 }
 0x20b   : > { %3113 = vst.msk [vmem:[%s5062_s25 + $0x4] sm:$0xf] %vm880_vm7, %v1518_v53 }
 0x20d   : > { %v2448_v56 = vpop.f32.mrb[40].mxu0 }
 0x20e   : > { %v2454_v57 = vadd.f32 %v2448_v56, %v2351_v62  ;;  %v2547_v58 = vpop.f32.mrb[40].mxu1  ;;  %v3925_v59 = vpop.f32.mrb[41].mxu0 }
 0x20f   : > { %v3943_v47 = vpop.f32.mrb[41].mxu1  ;;  %v2451_v60 = vpop.f32.mrb[42].mxu0 }
 0x210   : > { %v2553_v39 = vadd.f32 %v2547_v58, %v2454_v57  ;;  %v2550_v61 = vpop.f32.mrb[42].mxu1  ;;  %v3926_v63 = vpop.f32.mrb[43].mxu0 }
 0x211   : > { %v3944_v0 = vpop.f32.mrb[43].mxu1 }
 0x229   : > { %v2649_v2 = vpop.f32.mrb[44].mxu0 }
 0x22a   : > { %v2655_v3 = vadd.f32 %v2649_v2, %v2553_v39  ;;  %v2763_v4 = vpop.f32.mrb[44].mxu1  ;;  %v3961_v5 = vpop.f32.mrb[45].mxu0 }
 0x22b   : > { %v3979_v7 = vpop.f32.mrb[45].mxu1  ;;  %v2652_v8 = vpop.f32.mrb[46].mxu0 }
 0x22c   : > { %v2769_v54 = vadd.f32 %v2763_v4, %v2655_v3  ;;  %v2766_v9 = vpop.f32.mrb[46].mxu1  ;;  %v3962_v10 = vpop.f32.mrb[47].mxu0 }
 0x22d   : > { %v3980_v11 = vpop.f32.mrb[47].mxu1 }
 0x22e   : > { %v2770_v12 = vadd.f32 %v4951_v41, %v2769_v54 }
 0x230   : > { %v2771_v13 = vmax.f32 %v2770_v12, 0.0 }
 0x232   : > { %2777 = vrot.lane.b32.xlu1 %v2771_v13, %s4178_s15 }
 0x236   : > { %2773 = vrot.lane.b32.xlu1 %v2771_v13, %s4179_s20 }
 0x250   : > { %v2135_v14 = vpop.permute.xlu0 %2134  ;;  %v2139_v15 = vpop.permute.xlu1 %2138 }
 0x251   : > { %v2137_v16 = vsel %vm855_vm3, 0.0, %v2135_v14  ;;  %v2141_v17 = vmax.f32 %v2132_v29, %v2139_v15 }
 0x253   : > { %v2142_v18 = vmax.f32 %v2141_v17, %v2137_v16 }
 0x255   : > { %v2144_v19 = vrot.slane %v2142_v18, 1  ;;  %v2147_v55 = vrot.slane %v2142_v18, 2 }
 0x257   : > { %v2146_v20 = vmax.f32 %v2142_v18, %v2144_v19 }
 0x259   : > { %v2149_v6 = vmax.f32 %v2146_v20, %v2147_v55 }
 0x25b   : > { %v2151_v21 = vrot.slane %v2149_v6, 1  ;;  %v2153_v22 = vrot.slane %v2149_v6, 2  ;;  %v2155_v41 = vsel %vm874_vm4, %v2146_v20, %v2149_v6 }
 0x25d   : > { %v2156_v23 = vsel %vm876_vm5, %v2155_v41, %v2151_v21 }
 0x25e   : > { %v2157_v24 = vsel %vm878_vm6, %v2156_v23, %v2153_v22 }
 0x25f   : > { %3233 = vst.msk [vmem:[%s5062_s25 + $0x8] sm:$0xf] %vm880_vm7, %v2157_v24 }
 0x2a4   : > { %v2778_v25 = vpop.permute.xlu1 %2777 }
 0x2a5   : > { %v2780_v26 = vmax.f32 %v2771_v13, %v2778_v25 }
 0x2a8   : > { %v2774_v27 = vpop.permute.xlu1 %2773 }
 0x2a9   : > { %v2776_v28 = vsel %vm855_vm3, 0.0, %v2774_v27 }
 0x2aa   : > { %v2781_v29 = vmax.f32 %v2780_v26, %v2776_v28 }
 0x2ac   : > { %v2783_v30 = vrot.slane %v2781_v29, 1  ;;  %v2786_v46 = vrot.slane %v2781_v29, 2 }
 0x2ae   : > { %v2785_v31 = vmax.f32 %v2781_v29, %v2783_v30 }
 0x2b0   : > { %v2788_v62 = vmax.f32 %v2785_v31, %v2786_v46 }
 0x2b2   : > { %v2790_v32 = vrot.slane %v2788_v62, 1  ;;  %v2792_v33 = vrot.slane %v2788_v62, 2  ;;  %v2794_v1 = vsel %vm874_vm4, %v2785_v31, %v2788_v62 }
 0x2b4   : > { %v2795_v34 = vsel %vm876_vm5, %v2794_v1, %v2790_v32 }
 0x2b5   : > { %v2796_v35 = vsel %vm878_vm6, %v2795_v34, %v2792_v33 }
 0x2b6   : > { %3353 = vst.msk [vmem:[%s5062_s25 + $0xc] sm:$0xf] %vm880_vm7, %v2796_v35 }
 0x2b7 PF: > { %s13_s12 = sadd.s32 1, %s4174_s12  }
 0x2b8   : > { %p10_p4 = scmp.ge.s32.totalorder %s13_s12, 4  }
 0x2ba   :  { %12 = sbr.rel (!%p10_p4) target bundleno = 1 (0x1), region = 75 }

</bundles_post_ra>
